<compile_context>
chip_gen: v7x
topology: tpu7x:2x2x1
jax: 0.10.0
libtpu: 0.0.40
codegen_flags: <defaults>
</compile_context>

<pallas_src>
import functools
import math

import jax
import jax.numpy as jnp
from jax import lax
from jax.experimental import pallas as pl
from jax.experimental.pallas import tpu as pltpu


def _attn_project_kernel(qT_ref, f_ref, wkv_ref, wo_ref, bo_ref, out_ref,
                         *, num_heads, head_dim, tb):
    """Processes TB subdomains per grid step, channel-first.

    qT_ref  : [heads, d, Pq]  bf16, per-head Q^T, pre-scaled by 1/sqrt(d) (shared)
    f_ref   : [TB, E, Pkv]    this step's subdomains, X^T layout
    wkv_ref : [2E, E]         bf16 (rows 0..E-1 = Wk, rows E..2E-1 = Wv)
    wo_ref  : [E, E]          bf16 output projection
    bo_ref  : [E, 1]          f32 bias
    out_ref : [TB, E, Pq]     OUT^T per subdomain (lane-dense last dim)
    """
    d = head_dim
    E = wo_ref.shape[0]
    Pq = out_ref.shape[-1]
    bf16 = jnp.bfloat16

    # Hoisted once per grid step (constant across the TB subdomains).
    wkv = wkv_ref[...]                                        # [2E, E] bf16
    wo = wo_ref[...]                                          # [E, E]  bf16
    bias = jnp.broadcast_to(bo_ref[...], (E, Pq))             # [E, Pq] f32 (broadcast hoisted)

    # TODO(synk): for large num_heads / TB switch these static unrolls to
    #             lax.fori_loop(..., unroll=True) with pl.ds sublane slices.
    for t in range(tb):                                       # static unroll (tb small)
        xt = f_ref[t].astype(bf16)                            # [E, Pkv]

        # Fused K/V projection: one 2E-row MXU matmul, single bf16 downcast.
        kvt = jnp.dot(wkv, xt,
                      preferred_element_type=jnp.float32).astype(bf16)   # [2E, Pkv]

        head_outs = []
        for h in range(num_heads):                            # static unroll
            kth = kvt[h * d:(h + 1) * d, :]                   # [d, Pkv]  K_h^T (sublane slice)
            vth = kvt[E + h * d:E + (h + 1) * d, :]           # [d, Pkv]  V_h^T
            qth = qT_ref[h]                                   # [d, Pq]   Q_h^T (scale folded in)

            # Transposed scores: contract the leading d axis of both operands
            # (MXU-native transposed-LHS matmul) -> lane-dense [Pkv, Pq] tile.
            st = lax.dot_general(kth, qth, (((0,), (0,)), ((), ())),
                                 preferred_element_type=jnp.float32)     # [Pkv, Pq]
            m = jnp.max(st, axis=0, keepdims=True)            # [1, Pq]
            p = jnp.exp(st - m)                               # f32 (v5e-safe), unnormalized
            denom = jnp.sum(p, axis=0, keepdims=True)         # [1, Pq]

            # PV already transposed: o_h^T = V_h^T @ p -> [d, Pq]; deferred softmax
            # normalization is a lane-aligned broadcast of 1/denom over the small tile.
            ot = jnp.dot(vth, p.astype(bf16),
                         preferred_element_type=jnp.float32)             # [d, Pq]
            ot = ot * pl.reciprocal(denom, approx=False)      # exact: [1, Pq] is ~free
            head_outs.append(ot)

        # Stack heads along sublanes -> [E, Pq] (f32 slices are 8-row aligned),
        # then ONE output projection matmul per subdomain.
        attn_t = jnp.concatenate(head_outs, axis=0).astype(bf16)         # [E, Pq]
        acc = jnp.dot(wo, attn_t, preferred_element_type=jnp.float32)    # [E, Pq]
        out_ref[t] = (acc + bias).astype(out_ref.dtype)


def _cell_centered_unit_grid(th, tw, dtype=jnp.float32):
    # coords[i, j] = [(i + 0.5) / th, (j + 0.5) / tw]   (matches permute(1, 2, 0))
    ys = (jnp.arange(th, dtype=dtype) + 0.5) / th
    xs = (jnp.arange(tw, dtype=dtype) + 0.5) / tw
    return jnp.stack(jnp.meshgrid(ys, xs, indexing="ij"), axis=-1)       # [th, tw, 2]


def _pick_tb(bs, E, Pkv, Pq, elem_bytes=4, budget_bytes=24 << 20, max_tb=16):
    """Largest TB whose (double-buffered) streamed blocks fit the VMEM budget,
    preferring >= 4 grid steps (>= 2 per v7x TensorCore, keeps the software
    pipeline alive on both cores), then >= 2, then whatever divides BS."""
    def io_bytes(tb):
        # f input block + out block, x2 for double-buffering.
        return 2 * tb * E * (Pkv + Pq) * elem_bytes

    for min_steps in (4, 2, 1):
        cands = [c for c in range(1, min(bs, max_tb) + 1)
                 if bs % c == 0 and bs // c >= min_steps
                 and io_bytes(c) <= budget_bytes]
        if cands:
            return max(cands)
    return 1


def attention_project_to_new_grid_2d(f, params, *, num_heads, scale, tb=None,
                                     out_dtype=None):
    """f: [B, S, E, H, W]  ->  [B, S, E, int(scale*H), int(scale*W)]"""
    B, S, E, H, W = f.shape
    assert E % num_heads == 0
    d = E // num_heads
    assert d % 8 == 0, "head_dim must be a sublane multiple for aligned slices"
    th, tw = int(scale * H), int(scale * W)
    Pq, Pkv, BS = th * tw, H * W, B * S
    if out_dtype is None:
        out_dtype = f.dtype   # can be bf16 to halve output HBM traffic if tolerated

    if tb is None:
        tb = _pick_tb(BS, E, Pkv, Pq, elem_bytes=jnp.dtype(out_dtype).itemsize)
    assert BS % tb == 0
    grid = (BS // tb,)

    bf16 = jnp.bfloat16

    # --- tiny wrapper-side glue (computed once, amortized over all grid steps) ---
    # Query transposed per head: Q^T = Wq @ coords^T, pre-scaled by 1/sqrt(d).
    coords = _cell_centered_unit_grid(th, tw, jnp.float32)               # [th, tw, 2]
    qT = params["wq"] @ coords.reshape(-1, 2).T                          # [E, Pq]
    qT = (qT * (1.0 / math.sqrt(d))).reshape(num_heads, d, Pq).astype(bf16)

    # Weights in nn.Linear storage order (no transposes needed channel-first).
    wkv = params["wkv"].astype(bf16)                                     # [2E, E]
    wo = params["wo"].astype(bf16)                                       # [E, E]
    bo = params["bo"].reshape(E, 1).astype(jnp.float32)                  # [E, 1]

    # Input: pure reshape to channel-first tokens (X^T) -- no transpose pass over f.
    x = f.reshape(BS, E, Pkv)                                            # [(B S), E, HW]

    kernel = functools.partial(_attn_project_kernel,
                               num_heads=num_heads, head_dim=d, tb=tb)

    const = pl.Buffered(1)   # constant index_map -> single-buffer (halve their VMEM)

    out = pl.pallas_call(
        kernel,
        out_shape=jax.ShapeDtypeStruct((BS, E, Pq), out_dtype),
        grid_spec=pltpu.PrefetchScalarGridSpec(
            num_scalar_prefetch=0,
            grid=grid,
            in_specs=[
                pl.BlockSpec((num_heads, d, Pq), lambda b: (0, 0, 0),
                             pipeline_mode=const),                       # Q^T (shared)
                pl.BlockSpec((tb, E, Pkv), lambda b: (b, 0, 0)),         # TB subdomains
                pl.BlockSpec((2 * E, E), lambda b: (0, 0),
                             pipeline_mode=const),                       # Wkv fused
                pl.BlockSpec((E, E), lambda b: (0, 0),
                             pipeline_mode=const),                       # Wo
                pl.BlockSpec((E, 1), lambda b: (0, 0),
                             pipeline_mode=const),                       # bias
            ],
            out_specs=pl.BlockSpec((tb, E, Pq), lambda b: (b, 0, 0)),
        ),
        compiler_params=pltpu.CompilerParams(
            dimension_semantics=("parallel",),
            vmem_limit_bytes=32 << 20,   # explicit: safe on v5e/v6e/v7x, > TB budget
        ),
    )(qT, x, wkv, wo, bo)

    # [(B S), E, Pq] -> [B, S, E, th, tw]   (pure reshape, no transpose)
    return out.reshape(B, S, E, th, tw)


def _reference(f, params, *, num_heads, scale):
    """Pure-JAX f32 reference mirroring the PyTorch forward."""
    B, S, E, H, W = f.shape
    d = E // num_heads
    th, tw = int(scale * H), int(scale * W)
    coords = _cell_centered_unit_grid(th, tw, jnp.float32)
    q = coords.reshape(-1, 2) @ params["wq"].T                           # [Pq, E]
    q = q.reshape(th * tw, num_heads, d).transpose(1, 0, 2)              # [h, Pq, d]
    x = jnp.transpose(f, (0, 1, 3, 4, 2)).reshape(B * S, H * W, E)
    kv = x @ params["wkv"].T                                             # [BS, Pkv, 2E]
    kv = kv.reshape(B * S, H * W, 2, num_heads, d)
    k = kv[:, :, 0].transpose(0, 2, 1, 3)                                # [BS, h, Pkv, d]
    v = kv[:, :, 1].transpose(0, 2, 1, 3)
    s = jnp.einsum("hqd,bhkd->bhqk", q, k) / math.sqrt(d)
    p = jax.nn.softmax(s, axis=-1)
    o = jnp.einsum("bhqk,bhkd->bhqd", p, v)                              # [BS, h, Pq, d]
    o = o.transpose(0, 2, 1, 3).reshape(B * S, th * tw, E)
    out = o @ params["wo"].T + params["bo"]
    return jnp.transpose(out.reshape(B, S, th, tw, E), (0, 1, 4, 2, 3))


if __name__ == "__main__":
    B, S, E, H, W = 2, 2, 32, 8, 8
    num_heads, scale = 4, 2.0

    key = jax.random.PRNGKey(0)
    kf, kq, kkv, kwo, kbo = jax.random.split(key, 5)
    f = jax.random.normal(kf, (B, S, E, H, W), dtype=jnp.float32)
    params = {
        "wq": jax.random.normal(kq, (E, 2), dtype=jnp.float32) * 0.5,        # Linear(2, E)
        "wkv": jax.random.normal(kkv, (2 * E, E), dtype=jnp.float32) * 0.1,  # Linear(E, 2E)
        "wo": jax.random.normal(kwo, (E, E), dtype=jnp.float32) * 0.1,       # Linear(E, E)
        "bo": jax.random.normal(kbo, (E,), dtype=jnp.float32) * 0.1,
    }

    out = attention_project_to_new_grid_2d(f, params, num_heads=num_heads, scale=scale)
    out = jax.block_until_ready(out)

    ref = _reference(f, params, num_heads=num_heads, scale=scale)
    assert out.shape == (B, S, E, int(scale * H), int(scale * W)), out.shape
    max_err = float(jnp.max(jnp.abs(out - ref)))
    # bf16 matmul operands -> loosened tolerance vs f32 reference (recip is exact now).
    assert jnp.allclose(out, ref, atol=5e-2, rtol=5e-2), max_err

    print("KERNEL_OK")
</pallas_src>

<mosaic_0001>
module attributes {stable_mosaic.version = 11 : i64} {
  func.func @_attn_project_kernel(%arg0: i32, %arg1: memref<4x8x256xbf16, #tpu.memory_space<vmem>>, %arg2: memref<1x32x64xf32, #tpu.memory_space<vmem>>, %arg3: memref<64x32xbf16, #tpu.memory_space<vmem>>, %arg4: memref<32x32xbf16, #tpu.memory_space<vmem>>, %arg5: memref<32x1xf32, #tpu.memory_space<vmem>>, %arg6: memref<1x32x256xf32, #tpu.memory_space<vmem>>) attributes {dimension_semantics = [#tpu.dimension_semantics<parallel>], iteration_bounds = array<i64: 4>, scalar_prefetch = 0 : i64, scratch_operands = 0 : i64, tpu.core_type = #tpu.core_type<tc>, window_params = [{pipeline_mode = #tpu.pipeline_mode<synchronous>, transform_indices = @transform_0, window_bounds = array<i64: 4, 8, 256>}, {transform_indices = @transform_1, window_bounds = array<i64: 1, 32, 64>}, {pipeline_mode = #tpu.pipeline_mode<synchronous>, transform_indices = @transform_2, window_bounds = array<i64: 64, 32>}, {pipeline_mode = #tpu.pipeline_mode<synchronous>, transform_indices = @transform_3, window_bounds = array<i64: 32, 32>}, {pipeline_mode = #tpu.pipeline_mode<synchronous>, transform_indices = @transform_4, window_bounds = array<i64: 32, 1>}, {transform_indices = @transform_5, window_bounds = array<i64: 1, 32, 256>}]} {
    %c0 = arith.constant 0 : index
    %c0_0 = arith.constant 0 : index
    %0 = vector.load %arg3[%c0, %c0_0] : memref<64x32xbf16, #tpu.memory_space<vmem>>, vector<64x32xbf16>
    %c0_1 = arith.constant 0 : index
    %c0_2 = arith.constant 0 : index
    %1 = vector.load %arg4[%c0_1, %c0_2] : memref<32x32xbf16, #tpu.memory_space<vmem>>, vector<32x32xbf16>
    %c0_3 = arith.constant 0 : index
    %c0_4 = arith.constant 0 : index
    %2 = vector.load %arg5[%c0_3, %c0_4] : memref<32x1xf32, #tpu.memory_space<vmem>>, vector<32x1xf32>
    %3 = vector.shape_cast %2 : vector<32x1xf32> to vector<32x1xf32>
    %4 = vector.broadcast %3 : vector<32x1xf32> to vector<32x256xf32>
    %c0_5 = arith.constant 0 : index
    %c0_6 = arith.constant 0 : index
    %c0_7 = arith.constant 0 : index
    %5 = vector.load %arg2[%c0_5, %c0_6, %c0_7] : memref<1x32x64xf32, #tpu.memory_space<vmem>>, vector<1x32x64xf32>
    %6 = vector.shape_cast %5 : vector<1x32x64xf32> to vector<32x64xf32>
    %7 = arith.truncf %6 : vector<32x64xf32> to vector<32x64xbf16>
    %cst = arith.constant dense<0.000000e+00> : vector<64x64xf32>
    %8 = tpu.matmul %0, %7, %cst {dimension_numbers = #tpu.dot_dimension_numbers<[1], [0], [0], [1], [0, 0, 1, 1], [], []>} : vector<64x32xbf16>, vector<32x64xbf16>, vector<64x64xf32> -> vector<64x64xf32>
    %9 = arith.truncf %8 : vector<64x64xf32> to vector<64x64xbf16>
    %10 = vector.extract_strided_slice %9 {offsets = [0, 0], sizes = [8, 64], strides = [1, 1]} : vector<64x64xbf16> to vector<8x64xbf16>
    %11 = vector.extract_strided_slice %9 {offsets = [32, 0], sizes = [8, 64], strides = [1, 1]} : vector<64x64xbf16> to vector<8x64xbf16>
    %c0_8 = arith.constant 0 : index
    %c0_9 = arith.constant 0 : index
    %c0_10 = arith.constant 0 : index
    %12 = vector.load %arg1[%c0_8, %c0_9, %c0_10] : memref<4x8x256xbf16, #tpu.memory_space<vmem>>, vector<1x8x256xbf16>
    %13 = vector.shape_cast %12 : vector<1x8x256xbf16> to vector<8x256xbf16>
    %cst_11 = arith.constant dense<0.000000e+00> : vector<64x256xf32>
    %14 = tpu.matmul %10, %13, %cst_11 {dimension_numbers = #tpu.dot_dimension_numbers<[0], [0], [1], [1], [0, 1, 1, 1], [], []>} : vector<8x64xbf16>, vector<8x256xbf16>, vector<64x256xf32> -> vector<64x256xf32>
    %cst_12 = arith.constant dense<0xFF800000> : vector<256xf32>
    %15 = vector.multi_reduction <maximumf>, %14, %cst_12 [0] : vector<64x256xf32> to vector<256xf32>
    %16 = vector.shape_cast %15 : vector<256xf32> to vector<1x256xf32>
    %17 = vector.broadcast %16 : vector<1x256xf32> to vector<64x256xf32>
    %18 = arith.subf %14, %17 : vector<64x256xf32>
    %19 = math.exp %18 : vector<64x256xf32>
    %cst_13 = arith.constant dense<0.000000e+00> : vector<256xf32>
    %20 = vector.multi_reduction <add>, %19, %cst_13 [0] : vector<64x256xf32> to vector<256xf32>
    %21 = vector.shape_cast %20 : vector<256xf32> to vector<1x256xf32>
    %22 = arith.truncf %19 : vector<64x256xf32> to vector<64x256xbf16>
    %cst_14 = arith.constant dense<0.000000e+00> : vector<8x256xf32>
    %23 = tpu.matmul %11, %22, %cst_14 {dimension_numbers = #tpu.dot_dimension_numbers<[1], [0], [0], [1], [0, 0, 1, 1], [], []>} : vector<8x64xbf16>, vector<64x256xbf16>, vector<8x256xf32> -> vector<8x256xf32>
    %24 = tpu.reciprocal %21 : vector<1x256xf32> -> vector<1x256xf32>
    %25 = vector.broadcast %24 : vector<1x256xf32> to vector<8x256xf32>
    %26 = arith.mulf %23, %25 : vector<8x256xf32>
    %27 = vector.extract_strided_slice %9 {offsets = [8, 0], sizes = [8, 64], strides = [1, 1]} : vector<64x64xbf16> to vector<8x64xbf16>
    %28 = vector.extract_strided_slice %9 {offsets = [40, 0], sizes = [8, 64], strides = [1, 1]} : vector<64x64xbf16> to vector<8x64xbf16>
    %c1 = arith.constant 1 : index
    %c0_15 = arith.constant 0 : index
    %c0_16 = arith.constant 0 : index
    %29 = vector.load %arg1[%c1, %c0_15, %c0_16] : memref<4x8x256xbf16, #tpu.memory_space<vmem>>, vector<1x8x256xbf16>
    %30 = vector.shape_cast %29 : vector<1x8x256xbf16> to vector<8x256xbf16>
    %cst_17 = arith.constant dense<0.000000e+00> : vector<64x256xf32>
    %31 = tpu.matmul %27, %30, %cst_17 {dimension_numbers = #tpu.dot_dimension_numbers<[0], [0], [1], [1], [0, 1, 1, 1], [], []>} : vector<8x64xbf16>, vector<8x256xbf16>, vector<64x256xf32> -> vector<64x256xf32>
    %cst_18 = arith.constant dense<0xFF800000> : vector<256xf32>
    %32 = vector.multi_reduction <maximumf>, %31, %cst_18 [0] : vector<64x256xf32> to vector<256xf32>
    %33 = vector.shape_cast %32 : vector<256xf32> to vector<1x256xf32>
    %34 = vector.broadcast %33 : vector<1x256xf32> to vector<64x256xf32>
    %35 = arith.subf %31, %34 : vector<64x256xf32>
    %36 = math.exp %35 : vector<64x256xf32>
    %cst_19 = arith.constant dense<0.000000e+00> : vector<256xf32>
    %37 = vector.multi_reduction <add>, %36, %cst_19 [0] : vector<64x256xf32> to vector<256xf32>
    %38 = vector.shape_cast %37 : vector<256xf32> to vector<1x256xf32>
    %39 = arith.truncf %36 : vector<64x256xf32> to vector<64x256xbf16>
    %cst_20 = arith.constant dense<0.000000e+00> : vector<8x256xf32>
    %40 = tpu.matmul %28, %39, %cst_20 {dimension_numbers = #tpu.dot_dimension_numbers<[1], [0], [0], [1], [0, 0, 1, 1], [], []>} : vector<8x64xbf16>, vector<64x256xbf16>, vector<8x256xf32> -> vector<8x256xf32>
    %41 = tpu.reciprocal %38 : vector<1x256xf32> -> vector<1x256xf32>
    %42 = vector.broadcast %41 : vector<1x256xf32> to vector<8x256xf32>
    %43 = arith.mulf %40, %42 : vector<8x256xf32>
    %44 = vector.extract_strided_slice %9 {offsets = [16, 0], sizes = [8, 64], strides = [1, 1]} : vector<64x64xbf16> to vector<8x64xbf16>
    %45 = vector.extract_strided_slice %9 {offsets = [48, 0], sizes = [8, 64], strides = [1, 1]} : vector<64x64xbf16> to vector<8x64xbf16>
    %c2 = arith.constant 2 : index
    %c0_21 = arith.constant 0 : index
    %c0_22 = arith.constant 0 : index
    %46 = vector.load %arg1[%c2, %c0_21, %c0_22] : memref<4x8x256xbf16, #tpu.memory_space<vmem>>, vector<1x8x256xbf16>
    %47 = vector.shape_cast %46 : vector<1x8x256xbf16> to vector<8x256xbf16>
    %cst_23 = arith.constant dense<0.000000e+00> : vector<64x256xf32>
    %48 = tpu.matmul %44, %47, %cst_23 {dimension_numbers = #tpu.dot_dimension_numbers<[0], [0], [1], [1], [0, 1, 1, 1], [], []>} : vector<8x64xbf16>, vector<8x256xbf16>, vector<64x256xf32> -> vector<64x256xf32>
    %cst_24 = arith.constant dense<0xFF800000> : vector<256xf32>
    %49 = vector.multi_reduction <maximumf>, %48, %cst_24 [0] : vector<64x256xf32> to vector<256xf32>
    %50 = vector.shape_cast %49 : vector<256xf32> to vector<1x256xf32>
    %51 = vector.broadcast %50 : vector<1x256xf32> to vector<64x256xf32>
    %52 = arith.subf %48, %51 : vector<64x256xf32>
    %53 = math.exp %52 : vector<64x256xf32>
    %cst_25 = arith.constant dense<0.000000e+00> : vector<256xf32>
    %54 = vector.multi_reduction <add>, %53, %cst_25 [0] : vector<64x256xf32> to vector<256xf32>
    %55 = vector.shape_cast %54 : vector<256xf32> to vector<1x256xf32>
    %56 = arith.truncf %53 : vector<64x256xf32> to vector<64x256xbf16>
    %cst_26 = arith.constant dense<0.000000e+00> : vector<8x256xf32>
    %57 = tpu.matmul %45, %56, %cst_26 {dimension_numbers = #tpu.dot_dimension_numbers<[1], [0], [0], [1], [0, 0, 1, 1], [], []>} : vector<8x64xbf16>, vector<64x256xbf16>, vector<8x256xf32> -> vector<8x256xf32>
    %58 = tpu.reciprocal %55 : vector<1x256xf32> -> vector<1x256xf32>
    %59 = vector.broadcast %58 : vector<1x256xf32> to vector<8x256xf32>
    %60 = arith.mulf %57, %59 : vector<8x256xf32>
    %61 = vector.extract_strided_slice %9 {offsets = [24, 0], sizes = [8, 64], strides = [1, 1]} : vector<64x64xbf16> to vector<8x64xbf16>
    %62 = vector.extract_strided_slice %9 {offsets = [56, 0], sizes = [8, 64], strides = [1, 1]} : vector<64x64xbf16> to vector<8x64xbf16>
    %c3 = arith.constant 3 : index
    %c0_27 = arith.constant 0 : index
    %c0_28 = arith.constant 0 : index
    %63 = vector.load %arg1[%c3, %c0_27, %c0_28] : memref<4x8x256xbf16, #tpu.memory_space<vmem>>, vector<1x8x256xbf16>
    %64 = vector.shape_cast %63 : vector<1x8x256xbf16> to vector<8x256xbf16>
    %cst_29 = arith.constant dense<0.000000e+00> : vector<64x256xf32>
    %65 = tpu.matmul %61, %64, %cst_29 {dimension_numbers = #tpu.dot_dimension_numbers<[0], [0], [1], [1], [0, 1, 1, 1], [], []>} : vector<8x64xbf16>, vector<8x256xbf16>, vector<64x256xf32> -> vector<64x256xf32>
    %cst_30 = arith.constant dense<0xFF800000> : vector<256xf32>
    %66 = vector.multi_reduction <maximumf>, %65, %cst_30 [0] : vector<64x256xf32> to vector<256xf32>
    %67 = vector.shape_cast %66 : vector<256xf32> to vector<1x256xf32>
    %68 = vector.broadcast %67 : vector<1x256xf32> to vector<64x256xf32>
    %69 = arith.subf %65, %68 : vector<64x256xf32>
    %70 = math.exp %69 : vector<64x256xf32>
    %cst_31 = arith.constant dense<0.000000e+00> : vector<256xf32>
    %71 = vector.multi_reduction <add>, %70, %cst_31 [0] : vector<64x256xf32> to vector<256xf32>
    %72 = vector.shape_cast %71 : vector<256xf32> to vector<1x256xf32>
    %73 = arith.truncf %70 : vector<64x256xf32> to vector<64x256xbf16>
    %cst_32 = arith.constant dense<0.000000e+00> : vector<8x256xf32>
    %74 = tpu.matmul %62, %73, %cst_32 {dimension_numbers = #tpu.dot_dimension_numbers<[1], [0], [0], [1], [0, 0, 1, 1], [], []>} : vector<8x64xbf16>, vector<64x256xbf16>, vector<8x256xf32> -> vector<8x256xf32>
    %75 = tpu.reciprocal %72 : vector<1x256xf32> -> vector<1x256xf32>
    %76 = vector.broadcast %75 : vector<1x256xf32> to vector<8x256xf32>
    %77 = arith.mulf %74, %76 : vector<8x256xf32>
    %78 = tpu.concatenate %26, %43, %60, %77 in 0 : vector<8x256xf32>, vector<8x256xf32>, vector<8x256xf32>, vector<8x256xf32> -> vector<32x256xf32>
    %79 = arith.truncf %78 : vector<32x256xf32> to vector<32x256xbf16>
    %cst_33 = arith.constant dense<0.000000e+00> : vector<32x256xf32>
    %80 = tpu.matmul %1, %79, %cst_33 {dimension_numbers = #tpu.dot_dimension_numbers<[1], [0], [0], [1], [0, 0, 1, 1], [], []>} : vector<32x32xbf16>, vector<32x256xbf16>, vector<32x256xf32> -> vector<32x256xf32>
    %81 = arith.addf %80, %4 : vector<32x256xf32>
    %c0_34 = arith.constant 0 : index
    %c0_35 = arith.constant 0 : index
    %c0_36 = arith.constant 0 : index
    %82 = vector.load %arg6[%c0_34, %c0_35, %c0_36] : memref<1x32x256xf32, #tpu.memory_space<vmem>>, vector<1x32x256xf32>
    %83 = vector.shape_cast %82 : vector<1x32x256xf32> to vector<32x256xf32>
    %84 = vector.shape_cast %81 : vector<32x256xf32> to vector<1x32x256xf32>
    tpu.vector_store %arg6[%c0_34, %c0_35, %c0_36], %84 {strides = array<i32>} : memref<1x32x256xf32, #tpu.memory_space<vmem>>, vector<1x32x256xf32>,
    return
  }
  func.func @transform_0(%arg0: i32) -> (i32, i32, i32) {
    %c0_i32 = arith.constant 0 : i32
    %c0_i32_0 = arith.constant 0 : i32
    %c0_i32_1 = arith.constant 0 : i32
    %c0_i32_2 = arith.constant 0 : i32
    return %c0_i32, %c0_i32_0, %c0_i32_1 : i32, i32, i32
  }
  func.func @transform_1(%arg0: i32) -> (i32, i32, i32) {
    %c0_i32 = arith.constant 0 : i32
    %c0_i32_0 = arith.constant 0 : i32
    %c0_i32_1 = arith.constant 0 : i32
    return %arg0, %c0_i32, %c0_i32_0 : i32, i32, i32
  }
  func.func @transform_2(%arg0: i32) -> (i32, i32) {
    %c0_i32 = arith.constant 0 : i32
    %c0_i32_0 = arith.constant 0 : i32
    %c0_i32_1 = arith.constant 0 : i32
    return %c0_i32, %c0_i32_0 : i32, i32
  }
  func.func @transform_3(%arg0: i32) -> (i32, i32) {
    %c0_i32 = arith.constant 0 : i32
    %c0_i32_0 = arith.constant 0 : i32
    %c0_i32_1 = arith.constant 0 : i32
    return %c0_i32, %c0_i32_0 : i32, i32
  }
  func.func @transform_4(%arg0: i32) -> (i32, i32) {
    %c0_i32 = arith.constant 0 : i32
    %c0_i32_0 = arith.constant 0 : i32
    %c0_i32_1 = arith.constant 0 : i32
    return %c0_i32, %c0_i32_0 : i32, i32
  }
  func.func @transform_5(%arg0: i32) -> (i32, i32, i32) {
    %c0_i32 = arith.constant 0 : i32
    %c0_i32_0 = arith.constant 0 : i32
    %c0_i32_1 = arith.constant 0 : i32
    return %arg0, %c0_i32, %c0_i32_0 : i32, i32, i32
  }
}

</mosaic_0001>

<bundles_post_ra>
// kernel: tpu_custom_call.1
= control target key start
LH: loop header
LB: loop body
LE: loop exit
PB: predicated region body
PF: predicated region fallthrough
CT: control target
= control target key end

     0   :  { %10 = vsyncpa [#allocation3], 0  ;;  %s2464_s0 = inlined_call_operand.vmem [shape: bf16[4,8,256], index: 0, kind: input, shape index: {}]   ;;  %s2465_s1 = inlined_call_operand.hbm [shape: f32[4,32,64], index: 1, kind: input, shape index: {}]   ;;  %s2466_s2 = inlined_call_operand.vmem [shape: bf16[64,32], index: 2, kind: input, shape index: {}]   ;;  %s2467_s3 = inlined_call_operand.vmem [shape: bf16[32,32], index: 3, kind: input, shape index: {}]   ;;  %s2468_s4 = inlined_call_operand.vmem [shape: f32[32,1], index: 4, kind: input, shape index: {}]   ;;  %s2469_s5 = inlined_call_operand.hbm [shape: f32[4,32,256], index: 5, kind: output, shape index: {}]  }
   0x1   :  { %12 = vsyncpa [#allocation3 + $0x1], 0 }
   0x2   :  { %13 = vsyncpa [#allocation4], 0 }
   0x3   :  { %15 = vsyncpa [#allocation4 + $0x1], 0  ;;  %s2075_s18 = smov 0   ;;  %s2077_s19 = smov 0  }
   0x4   :  { %s2079_s20 = smov 0   ;;  %s2081_s21 = smov 0  }
   0x5 LB: > { %s2096_s22 = sadd.s32 4294967295, %s2036_s21   ;;  %s1648_s23 = sadd.s32 4294967294, %s2036_s21   ;;  %s2036_s21 = sphi %s2081_s21, %s2481_s21   ;;  %s2032_s20 = sphi %s2079_s20, %s2480_s20   ;;  %s2028_s19 = sphi %s2077_s19, %s2479_s19   ;;  %s2024_s18 = sphi %s2075_s18, %s2478_s18  }
   0x6   : > { %s2100_s24 = sadd.s32 1, %s2036_s21   ;;  %s49_s25 = sadd.s32 1, %s2032_s20 }
   0x7   : > { %s46_s26 = ssub.s32 %s2036_s21, %s2100_s24  ;;  %p56_p0 = scmp.ne.s32.totalorder %s2032_s20, %s2028_s19 }
   0x8   : > { %p47_p1 = scmp.eq.s32.totalorder %s46_s26, 0  ;;  %p57_p2 = scmp.eq.s32.totalorder %s2036_s21, 0 }
   0x9   : > { %p62_p3 = scmp.ne.s32.totalorder %s2028_s19, %s2024_s18  ;;  %p63_p4 = scmp.eq.s32.totalorder %s2096_s22, 0 }
   0xa   : > { %s2112_s27 = scalar_select %p47_p1, %s2032_s20, %s49_s25  }
   0xb   : > { %p2114_p5 = por %p57_p2, %p56_p0  ;;  %p2118_p6 = por %p63_p4, %p62_p3 }
   0xc   : > { %p149_p7 = scmp.eq.s32.totalorder %s2096_s22, 3  ;;  %p155_p8 = scmp.eq.s32.totalorder %s1648_s23, 3 }
   0xd   : > { %p1741_p9 = scmp.lt.s32.totalorder %s2036_s21, 4  ;;  %s187_s7 = sand.u32 1, %s2032_s20  }
   0xe   : > { %p2124_p10 = por %p149_p7, %p56_p0  ;;  %p2128_p11 = por %p155_p8, %p62_p3 }
   0xf   : > { %s1709_s8 = sshll.u32 %s2036_s21, 9  ;;  %s1651_s9 = sshll.u32 %s187_s7, 5 }
  0x10   : > { %s2473_s30 = scalar_select %p2124_p10, 1, 0 }
  0x11   : > { %s2474_s6 = scalar_select %p2128_p11, 1, 0 }
  0x12   : > { %s2137_s12 = scalar_lea.hbm %s2465_s1, %s1709_s8  ;;  %s191_s13 = scalar_lea.vmem [#allocation2], %s1651_s9 }
  0x13   : > { %s198_s14 = sshll.u32 %s191_s13, 4  ;;  %p2141_p12 = pnand %p1741_p9, %p2114_p5  ;;  %s2145_s14 = int_to_ptr.vmem [resolvable:$true] %s198_s14 }
  0x14   : > { %s2147_s16 = scalar_lea.sflag [#allocation3], %s187_s7  ;;  %s1940_s17 = scalar_lea.hbm %s2137_s12, 512 }
  0x15   : > { %p1941_p13 = scmp.ne.s32.totalorder %s2137_s12, %s1940_s17  ;;  %p1942_p0 = pneg %p2141_p12 }
  0x16   : > { %s1945_s26 = scalar_lea.hbm %s2465_s1, 2048  ;;  %p1946_p3 = scmp.lt.u32.totalorder %s2137_s12, %s2465_s1 }
  0x17   : > { %p1943_p1 = pnand %p1942_p0, %p1941_p13  ;;  %p1947_p4 = scmp.lt.u32.totalorder %s1945_s26, %s1940_s17 }
  0x18   : > { %p1949_p7 = scmp.lt.u32.totalorder %s1940_s17, %s2137_s12 }
  0x19   : > { %p1944_p2 = pneg %p1943_p1  ;;  %p1948_p5 = por %p1947_p4, %p1946_p3 }
  0x1b   : > { %p1950_p8 = por %p1949_p7, %p1948_p5 }
  0x1d   : > { %p1951_p9 = pnand %p1950_p8, %p1944_p2 }
  0x1f   : > { %1954 = shalt.err (!%p1951_p9)
}
  0x20   : > { %s1955_s7 = scalar_lea.vmem %s2145_s14, 512  ;;  %s2038_s9 = smov [#allocation2]  }
  0x21   : > { %p1956_p13 = scmp.ne.s32.totalorder %s2145_s14, %s1955_s7  ;;  %s1960_s10 = sshll.u32 %s2038_s9, 4  ;;  %s1961_s10 = int_to_ptr.vmem [resolvable:$false] %s1960_s10 }
  0x22   : > { %s1962_s11 = scalar_lea.vmem %s1961_s10, 1024  ;;  %p1963_p10 = scmp.lt.s32.totalorder %s2145_s14, %s1961_s10 }
  0x23   : > { %p1958_p1 = pnand %p1956_p13, %p1942_p0  ;;  %p1964_p3 = scmp.lt.s32.totalorder %s1962_s11, %s1955_s7 }
  0x25   : > { %p1959_p11 = pneg %p1958_p1  ;;  %p1965_p4 = por %p1964_p3, %p1963_p10 }
  0x27   : > { %p1966_p5 = pnand %p1965_p4, %p1959_p11 }
  0x29   : > { %1969 = shalt.err (!%p1966_p5)
}
  0x2a   : > { %s2039_s13 = smov 128   ;;  %s2040_s17 = smov 8  }
  0x2b   : > { %1736 = dma.hbm_to_vmem [thread:$0]  (!%p2141_p12), %s2137_s12, 512, %s2145_s14, %s2147_s16, %s2039_s13, %s2039_s13, %s2040_s17  }
  0x2c   : > { %p1654_p0 = scmp.ge.s32.totalorder %s2036_s21, 1  ;;  %p206_p2 = scmp.lt.s32.totalorder %s2036_s21, 5 }
  0x2e   : > { %p207_p7 = pnand %p1654_p0, %p206_p2 }
  0x2f   : > { %s2178_s23 = sand.u32 (!%p207_p7), 1, %s2028_s19  }
  0x30   : > { %210 = sbr.rel (%p207_p7) target bundleno = 2056 (0x808), region = 40  ;;  %s1655_s25 = sshll.u32 (!%p207_p7), %s2178_s23, 5 }
  0x31   : > { %s213_s26 = scalar_lea.sflag (!%p207_p7), [#allocation3], %s2178_s23  ;;  %s216_s28 = scalar_lea.vmem (!%p207_p7), [#allocation2], %s1655_s25 }
  0x37   : > { %2015 = dma.done.wait (%p2118_p6), %s213_s26, 512  }
  0x38   : > { %2017 = vsyncadd (%p2118_p6), %s213_s26, 4294966784  ;;  %v280_v0 = vld [vmem:[%s216_s28] sm:$0xff]  ;;  %v281_v1 = vld [vmem:[%s216_s28 + $0x8] sm:$0xff]  ;;  %vm306_vm0 = vcmask 261120   ;;  %vm423_vm1 = vcmask 1043456   ;;  %v2041_v11 = vmov 0  }
  0x39   : > { %v282_v2 = vld [vmem:[%s216_s28 + $0x10] sm:$0xff]  ;;  %v284_v3 = vpack.c.bf16 %v281_v1, %v280_v0  ;;  %v283_v4 = vld [vmem:[%s216_s28 + $0x18] sm:$0xff]  ;;  %v1782_v6 = vld [vmem:[%s2466_s2] sm:$0xff]   ;;  %462 = vmatprep.mubr.bf16.mxu1 %v2041_v11  ;;  %vm410_vm2 = vcmask 64512   ;;  %vm611_vm3 = vcmask 523264   ;;  %s1656_s26 = sshll.u32 %s2178_s23, 6 }
  0x3a   : > { %v285_v5 = vpack.c.bf16 %v283_v4, %v282_v2  ;;  %1721 = vmatprep.mubr.msk.bf16.mxu0 %vm306_vm0, %v1782_v6  ;;  %v1783_v7 = vld [vmem:[%s2466_s2 + $0x8] sm:$0xff]   ;;  %v388_v8 = vld [vmem:[%s2464_s0] sm:$0xff]  ;;  %v1786_v19 = vld [vmem:[%s2466_s2 + $0x10] sm:$0xff]   ;;  %s242_s28 = scalar_lea.vmem [#allocation5], %s1656_s26  ;;  %s1710_s14 = sshll.u32 %s2096_s22, 10 }
  0x3b   : > { %1717 = vmatprep.subr.bf16.mxu0 %v284_v3  ;;  %v1666_v9 = vcombine.high %v388_v8, %v388_v8  ;;  %v1665_v10 = vcombine.low %v388_v8, %v388_v8  ;;  %v1787_v20 = vld [vmem:[%s2466_s2 + $0x18] sm:$0xff]   ;;  %s1575_s12 = sshll.u32 %s242_s28, 4  ;;  %s2421_s29 = scalar_lea.hbm %s2469_s5, %s1710_s14  ;;  %s2416_s12 = int_to_ptr.vmem [resolvable:$true] %s1575_s12 }
  0x3c   : > { %1718 = vmatpush3.bf16.msra.mxu0 %v284_v3  ;;  %s1562_s22 = scalar_lea.sflag [#allocation4], %s2178_s23  ;;  %s1970_s8 = scalar_lea.vmem %s2416_s12, 1024 }
  0x3d   : > { %1719 = vmatprep.subr.bf16.mxu0 %v285_v5  ;;  %1667 = vmatprep.subr.msk.bf16.mxu1 %vm423_vm1, %v1666_v9  ;;  %v425_v12 = vsel %vm423_vm1, %v1665_v10, 0  ;;  %p1971_p6 = scmp.ne.s32.totalorder %s2416_s12, %s1970_s8  ;;  %p2476_p10 = scmp.ne.s32.totalorder %s2473_s30, 0 }
  0x3e   : > { %431 = vmatpush1.bf16.msra.mxu1 %v425_v12  ;;  %s2042_s7 = smov [#allocation5]  }
  0x3f   : > { %p1972_p11 = pnand %p1971_p6, %p2476_p10  ;;  %s1974_s9 = sshll.u32 %s2042_s7, 4  ;;  %s1975_s9 = int_to_ptr.vmem [resolvable:$false] %s1974_s9 }
  0x40   : > { %1720 = vmatpush3.bf16.msra.mxu0 %v285_v5  ;;  %s1976_s10 = scalar_lea.vmem %s1975_s9, 2048  ;;  %p1977_p8 = scmp.lt.s32.totalorder %s2416_s12, %s1975_s9 }
  0x41   : > { %p1973_p12 = pneg %p1972_p11  ;;  %p1978_p9 = scmp.lt.s32.totalorder %s1976_s10, %s1970_s8 }
  0x43   : > { %1722 = vmatmul.mubr.msk.bf16.vlgmr.msra.gmra.mrb[0].mxu0 %vm306_vm0, %v1783_v7  ;;  %p1979_p13 = por %p1978_p9, %p1977_p8 }
  0x44   : > { %1725 = vmatprep.mubr.msk.bf16.mxu0 %vm306_vm0, %v1786_v19 }
  0x45   : > { %p1980_p1 = pnand %p1979_p13, %p1973_p12 }
  0x4b   : > { %1726 = vmatmul.mubr.msk.bf16.gmra.mrb[4].mxu0 %vm306_vm0, %v1787_v20 }
  0x4c   : > { %647 = vmatprep.mubr.bf16.mxu0 %v2041_v11 }
 0x116   : > { %v1723_v13 = vpop.f32.mrb[0].mxu0 }
 0x117   : > { %v353_v14 = vpop.f32.mrb[1].mxu0 }
 0x118   : > { %v1724_v15 = vpop.f32.mrb[2].mxu0 }
 0x119   : > { %v385_v16 = vpack.c.bf16 %v1724_v15, %v1723_v13  ;;  %v356_v17 = vpop.f32.mrb[3].mxu0 }
 0x11a   : > { %v384_v18 = vpack.c.bf16 %v356_v17, %v353_v14 }
 0x11b   : > { %937 = vxpose.xlu1.c.b16.start.end [1/1] (short) (narrow) %v385_v16, 64  ;;  %v1208_v21 = vrot.slane %v385_v16, 4 }
 0x11c   : > { %389 = vxpose.xlu0.c.b16.start.end [1/1] (short) (narrow) %v384_v18, 64  ;;  %v663_v22 = vrot.slane %v384_v18, 4 }
 0x11e   : > { %v1727_v27 = vpop.f32.mrb[4].mxu0 }
 0x11f   : > { %v369_v28 = vpop.f32.mrb[5].mxu0 }
 0x120   : > { %v1728_v29 = vpop.f32.mrb[6].mxu0 }
 0x121   : > { %v2219_v30 = vpack.c.bf16 %v1728_v29, %v1727_v27  ;;  %v372_v31 = vpop.f32.mrb[7].mxu0 }
 0x122   : > { %v2221_v32 = vpack.c.bf16 %v372_v31, %v369_v28 }
 0x128   : > { %1210 = vxpose.xlu1.c.b16.start.end [1/1] (short) (narrow) %v1208_v21, 64 }
 0x129   : > { %665 = vxpose.xlu0.c.b16.start.end [1/1] (short) (narrow) %v663_v22, 64 }
 0x12c   : > { %1781 = vset.pattern.permute.xlu1 %v2041_v11 }
 0x132   : > { %1780 = vset.pattern.permute.xlu0 %v2041_v11 }
 0x182   : > { %v397_v23 = vpop.trf.xlu0 }
 0x183   : > { %1668 = vmatmul.mubr.msk.bf16.vlgmr.msra.gmra.mrb[0].mxu1 %vm410_vm2, %v397_v23 }
 0x184   : > { %472 = vmatprep.mubr.bf16.mxu1 %v2041_v11 }
 0x186   : > { %v398_v24 = vpop.trf.xlu0 }
 0x18a   : > { %v399_v25 = vpop.trf.xlu0 }
 0x18b   : > { %1669 = vmatmul.mubr.msk.bf16.gmra.mrb[4].mxu1 %vm410_vm2, %v398_v24 }
 0x18c   : > { %482 = vmatprep.mubr.bf16.mxu1 %v2041_v11 }
 0x18e   : > { %v400_v26 = vpop.trf.xlu0 }
 0x193   : > { %1670 = vmatmul.mubr.msk.bf16.gmra.mrb[8].mxu1 %vm410_vm2, %v399_v25 }
 0x194   : > { %492 = vmatprep.mubr.bf16.mxu1 %v2041_v11 }
 0x19b   : > { %1671 = vmatmul.mubr.msk.bf16.gmra.mrb[12].mxu1 %vm410_vm2, %v400_v26 }
 0x19c   : > { %922 = vmatprep.mubr.bf16.mxu1 %v2041_v11 }
 0x256   : > { %v464_v33 = vpop.f32.mrb[0].mxu1 }
 0x257   : > { %v2223_v34 = vpop.f32.mrb[1].mxu1 }
 0x258   : > { %v468_v35 = vpop.f32.mrb[2].mxu1 }
 0x259   : > { %v2225_v36 = vpop.f32.mrb[3].mxu1 }
 0x25e   : > { %v474_v37 = vpop.f32.mrb[4].mxu1 }
 0x25f   : > { %v503_v38 = vmax.f32 %v464_v33, %v474_v37  ;;  %v2227_v39 = vpop.f32.mrb[5].mxu1 }
 0x260   : > { %v516_v40 = vmax.f32 %v2223_v34, %v2227_v39  ;;  %v478_v41 = vpop.f32.mrb[6].mxu1 }
 0x261   : > { %v504_v42 = vmax.f32 %v468_v35, %v478_v41  ;;  %v2231_v43 = vpop.f32.mrb[7].mxu1 }
 0x262   : > { %v517_v44 = vmax.f32 %v2225_v36, %v2231_v43 }
 0x266   : > { %v484_v45 = vpop.f32.mrb[8].mxu1 }
 0x267   : > { %v505_v46 = vmax.f32 %v503_v38, %v484_v45  ;;  %v2235_v47 = vpop.f32.mrb[9].mxu1 }
 0x268   : > { %v518_v48 = vmax.f32 %v516_v40, %v2235_v47  ;;  %v488_v49 = vpop.f32.mrb[10].mxu1 }
 0x269   : > { %v506_v50 = vmax.f32 %v504_v42, %v488_v49  ;;  %v2238_v51 = vpop.f32.mrb[11].mxu1 }
 0x26a   : > { %v519_v52 = vmax.f32 %v517_v44, %v2238_v51 }
 0x26e   : > { %v494_v53 = vpop.f32.mrb[12].mxu1 }
 0x26f   : > { %v507_v54 = vmax.f32 %v505_v46, %v494_v53  ;;  %v496_v55 = vpop.f32.mrb[13].mxu1 }
 0x270   : > { %v520_v56 = vmax.f32 %v518_v48, %v496_v55  ;;  %v498_v57 = vpop.f32.mrb[14].mxu1 }
 0x271   : > { %v508_v58 = vmax.f32 %v506_v50, %v498_v57  ;;  %v500_v59 = vpop.f32.mrb[15].mxu1 }
 0x272   : > { %v521_v60 = vmax.f32 %v519_v52, %v500_v59 }
 0x273   : > { %v509_v61 = vmax.f32 %v507_v54, %v508_v58 }
 0x274   : > { %v522_v62 = vmax.f32 %v520_v56, %v521_v60 }
 0x275   : > { %v510_v63 = vrot.slane %v509_v61, 4 }
 0x276   : > { %v523_v0 = vrot.slane %v522_v62, 4 }
 0x277   : > { %v511_v1 = vmax.f32 %v509_v61, %v510_v63 }
 0x278   : > { %v524_v2 = vmax.f32 %v522_v62, %v523_v0 }
 0x279   : > { %v512_v3 = vrot.slane %v511_v1, 2 }
 0x27a   : > { %v525_v4 = vrot.slane %v524_v2, 2 }
 0x27b   : > { %v513_v5 = vmax.f32 %v511_v1, %v512_v3 }
 0x27c   : > { %v526_v6 = vmax.f32 %v524_v2, %v525_v4 }
 0x27d   : > { %v514_v7 = vrot.slane %v513_v5, 1 }
 0x27e   : > { %v527_v8 = vrot.slane %v526_v6, 1 }
 0x27f   : > { %v515_v9 = vmax.f32 %v513_v5, %v514_v7 }
 0x280   : > { %v528_v10 = vmax.f32 %v526_v6, %v527_v8 }
 0x281   : > { %v529_v12 = vsub.f32 %v464_v33, %v515_v9  ;;  %v531_v13 = vsub.f32 %v468_v35, %v515_v9  ;;  %v533_v14 = vsub.f32 %v474_v37, %v515_v9  ;;  %v535_v15 = vsub.f32 %v478_v41, %v515_v9 }
 0x282   : > { %v537_v16 = vsub.f32 %v484_v45, %v515_v9  ;;  %v539_v17 = vsub.f32 %v488_v49, %v515_v9  ;;  %v541_v18 = vsub.f32 %v494_v53, %v515_v9  ;;  %v543_v19 = vsub.f32 %v498_v57, %v515_v9 }
 0x283   : > { %v545_v20 = vmul.f32 1.442695, %v529_v12  ;;  %v549_v21 = vmul.f32 1.442695, %v531_v13  ;;  %v553_v22 = vmul.f32 1.442695, %v533_v14  ;;  %v530_v23 = vsub.f32 %v2223_v34, %v528_v10 }
 0x284   : > { %v557_v24 = vmul.f32 1.442695, %v535_v15  ;;  %v532_v25 = vsub.f32 %v2225_v36, %v528_v10  ;;  %v561_v26 = vmul.f32 1.442695, %v537_v16  ;;  %v565_v27 = vmul.f32 1.442695, %v539_v17 }
 0x285   : > { %1796 = vpow2.f32 %v545_v20  ;;  %v534_v28 = vsub.f32 %v2227_v39, %v528_v10  ;;  %v536_v29 = vsub.f32 %v2231_v43, %v528_v10  ;;  %v538_v31 = vsub.f32 %v2235_v47, %v528_v10 }
 0x286   : > { %1798 = vpow2.f32 %v549_v21  ;;  %v540_v33 = vsub.f32 %v2238_v51, %v528_v10  ;;  %v569_v35 = vmul.f32 1.442695, %v541_v18  ;;  %v542_v37 = vsub.f32 %v496_v55, %v528_v10 }
 0x287   : > { %1800 = vpow2.f32 %v553_v22  ;;  %v544_v38 = vsub.f32 %v500_v59, %v528_v10  ;;  %v573_v34 = vmul.f32 1.442695, %v543_v19  ;;  %v547_v36 = vmul.f32 1.442695, %v530_v23  ;;  %v1673_v19 = vld [vmem:[%s2464_s0 + $0x8] sm:$0xff] }
 0x288   : > { %1802 = vpow2.f32 %v557_v24  ;;  %v551_v40 = vmul.f32 1.442695, %v532_v25  ;;  %v555_v41 = vmul.f32 1.442695, %v534_v28  ;;  %v559_v39 = vmul.f32 1.442695, %v536_v29  ;;  %v673_v25 = vpop.trf.xlu0 }
 0x289   : > { %1804 = vpow2.f32 %v561_v26  ;;  %v563_v42 = vmul.f32 1.442695, %v538_v31  ;;  %v567_v43 = vmul.f32 1.442695, %v540_v33  ;;  %v571_v45 = vmul.f32 1.442695, %v542_v37 }
 0x28a   : > { %1806 = vpow2.f32 %v565_v27  ;;  %v575_v47 = vmul.f32 1.442695, %v544_v38  ;;  %v1675_v22 = vcombine.high %v1673_v19, %v1673_v19  ;;  %v1674_v23 = vcombine.low %v1673_v19, %v1673_v19 }
 0x28b   : > { %1808 = vpow2.f32 %v569_v35 }
 0x28c   : > { %1810 = vpow2.f32 %v573_v34  ;;  %v699_v24 = vsel %vm423_vm1, %v1674_v23, 0  ;;  %v674_v26 = vpop.trf.xlu0 }
 0x28d   : > { %1812 = vpow2.f32 %v547_v36 }
 0x28e   : > { %1814 = vpow2.f32 %v551_v40 }
 0x28f   : > { %v1797_v44 = vpop.eup %1796  ;;  %1816 = vpow2.f32 %v555_v41 }
 0x290   : > { %v1799_v46 = vpop.eup %1798  ;;  %1818 = vpow2.f32 %v559_v39  ;;  %v675_v27 = vpop.trf.xlu0 }
 0x291   : > { %v1801_v48 = vpop.eup %1800  ;;  %v577_v49 = vadd.f32 %v1799_v46, %v1797_v44  ;;  %1820 = vpow2.f32 %v563_v42  ;;  %v603_v50 = vpack.c.bf16 %v1799_v46, %v1797_v44 }
 0x292   : > { %v1803_v51 = vpop.eup %1802  ;;  %1822 = vpow2.f32 %v567_v43 }
 0x293   : > { %v1805_v52 = vpop.eup %1804  ;;  %v578_v53 = vadd.f32 %v1801_v48, %v577_v49  ;;  %1824 = vpow2.f32 %v571_v45  ;;  %v605_v54 = vpack.c.bf16 %v1803_v51, %v1801_v48 }
 0x294   : > { %v1807_v55 = vpop.eup %1806  ;;  %1826 = vpow2.f32 %v575_v47  ;;  %v676_v28 = vpop.trf.xlu0 }
 0x295   : > { %v1809_v56 = vpop.eup %1808  ;;  %v579_v57 = vadd.f32 %v1803_v51, %v578_v53  ;;  %v607_v58 = vpack.c.bf16 %v1807_v55, %v1805_v52 }
 0x296   : > { %v1811_v59 = vpop.eup %1810 }
 0x297   : > { %v1813_v60 = vpop.eup %1812  ;;  %v580_v61 = vadd.f32 %v1805_v52, %v579_v57  ;;  %v609_v62 = vpack.c.bf16 %v1811_v59, %v1809_v56 }
 0x298   : > { %v1815_v63 = vpop.eup %1814 }
 0x299   : > { %v1817_v0 = vpop.eup %1816  ;;  %v581_v1 = vadd.f32 %v1807_v55, %v580_v61  ;;  %v590_v2 = vadd.f32 %v1815_v63, %v1813_v60  ;;  %v604_v3 = vpack.c.bf16 %v1815_v63, %v1813_v60 }
 0x29a   : > { %v1819_v4 = vpop.eup %1818 }
 0x29b   : > { %v1821_v5 = vpop.eup %1820  ;;  %v582_v6 = vadd.f32 %v1809_v56, %v581_v1  ;;  %v591_v7 = vadd.f32 %v1817_v0, %v590_v2  ;;  %615 = vmatprep.subr.bf16.mxu0 %v604_v3  ;;  %v606_v8 = vpack.c.bf16 %v1819_v4, %v1817_v0 }
 0x29c   : > { %v1823_v9 = vpop.eup %1822  ;;  %616 = vmatpush1.bf16.msra.mxu0 %v603_v50 }
 0x29d   : > { %v1825_v10 = vpop.eup %1824  ;;  %v583_v12 = vadd.f32 %v1811_v59, %v582_v6  ;;  %v592_v13 = vadd.f32 %v1819_v4, %v591_v7  ;;  %617 = vmatprep.subr.bf16.mxu0 %v606_v8  ;;  %v608_v14 = vpack.c.bf16 %v1823_v9, %v1821_v5 }
 0x29e   : > { %v1827_v15 = vpop.eup %1826 }
 0x29f   : > { %v593_v16 = vadd.f32 %v1821_v5, %v592_v13  ;;  %v610_v17 = vpack.c.bf16 %v1827_v15, %v1825_v10  ;;  %v584_v29 = vrot.slane %v583_v12, 4 }
 0x2a0   : > { %618 = vmatpush1.bf16.msra.mxu0 %v605_v54 }
 0x2a1   : > { %v594_v18 = vadd.f32 %v1823_v9, %v593_v16  ;;  %619 = vmatprep.subr.bf16.mxu0 %v608_v14  ;;  %v585_v33 = vadd.f32 %v584_v29, %v583_v12 }
 0x2a3   : > { %v595_v20 = vadd.f32 %v1825_v10, %v594_v18  ;;  %v586_v37 = vrot.slane %v585_v33, 2 }
 0x2a4   : > { %620 = vmatpush1.bf16.msra.mxu0 %v607_v58 }
 0x2a5   : > { %v596_v21 = vadd.f32 %v1827_v15, %v595_v20  ;;  %621 = vmatprep.subr.bf16.mxu0 %v610_v17  ;;  %v587_v34 = vadd.f32 %v586_v37, %v585_v33 }
 0x2a7   : > { %v597_v31 = vrot.slane %v596_v21, 4  ;;  %v588_v40 = vrot.slane %v587_v34, 1 }
 0x2a8   : > { %622 = vmatpush1.bf16.msra.mxu0 %v609_v62 }
 0x2a9   : > { %1676 = vmatprep.subr.msk.bf16.mxu0 %vm423_vm1, %v1675_v22  ;;  %v598_v35 = vadd.f32 %v597_v31, %v596_v21  ;;  %v589_v39 = vadd.f32 %v588_v40, %v587_v34 }
 0x2ab   : > { %1672 = vmatmul.mubr.msk.bf16.vlgmr.msra.gmra.mrb[8].mxu0 %vm611_vm3, %v2221_v32  ;;  %v599_v38 = vrot.slane %v598_v35, 2  ;;  %1828 = vrcp.f32 %v589_v39 }
 0x2ac   : > { %705 = vmatpush1.bf16.msra.mxu0 %v699_v24  ;;  %736 = vmatprep.mubr.bf16.mxu0 %v2041_v11 }
 0x2ad   : > { %v600_v36 = vadd.f32 %v599_v38, %v598_v35 }
 0x2af   : > { %v601_v41 = vrot.slane %v600_v36, 1 }
 0x2b1   : > { %v602_v42 = vadd.f32 %v601_v41, %v600_v36 }
 0x2b3   : > { %1677 = vmatmul.mubr.msk.bf16.vlgmr.msra.gmra.mrb[12].mxu0 %vm410_vm2, %v673_v25  ;;  %1830 = vrcp.f32 %v602_v42 }
 0x2b4   : > { %746 = vmatprep.mubr.bf16.mxu0 %v2041_v11 }
 0x2b5   : > { %v1829_v43 = vpop.eup %1828 }
 0x2bb   : > { %1678 = vmatmul.mubr.msk.bf16.gmra.mrb[16].mxu0 %vm410_vm2, %v674_v26 }
 0x2bc   : > { %756 = vmatprep.mubr.bf16.mxu0 %v2041_v11 }
 0x2bd   : > { %v1831_v45 = vpop.eup %1830 }
 0x2c3   : > { %1679 = vmatmul.mubr.msk.bf16.gmra.mrb[20].mxu0 %vm410_vm2, %v675_v27 }
 0x2c4   : > { %766 = vmatprep.mubr.bf16.mxu0 %v2041_v11 }
 0x2cb   : > { %1680 = vmatmul.mubr.msk.bf16.gmra.mrb[24].mxu0 %vm410_vm2, %v676_v28 }
 0x2cc   : > { %1192 = vmatprep.mubr.bf16.mxu0 %v2041_v11 }
 0x37e   : > { %v649_v44 = vpop.f32.mrb[8].mxu0 }
 0x37f   : > { %v2263_v46 = vmul.f32 %v1829_v43, %v649_v44  ;;  %v651_v47 = vpop.f32.mrb[9].mxu0 }
 0x380   : > { %v2265_v48 = vmul.f32 %v1831_v45, %v651_v47  ;;  %v653_v49 = vpop.f32.mrb[10].mxu0 }
 0x381   : > { %v654_v50 = vpop.f32.mrb[11].mxu0 }
 0x386   : > { %v738_v51 = vpop.f32.mrb[12].mxu0 }
 0x387   : > { %v2267_v52 = vpop.f32.mrb[13].mxu0 }
 0x388   : > { %v742_v53 = vpop.f32.mrb[14].mxu0 }
 0x389   : > { %v2269_v54 = vpop.f32.mrb[15].mxu0 }
 0x38e   : > { %v748_v55 = vpop.f32.mrb[16].mxu0 }
 0x38f   : > { %v777_v56 = vmax.f32 %v738_v51, %v748_v55  ;;  %v2271_v57 = vpop.f32.mrb[17].mxu0 }
 0x390   : > { %v790_v58 = vmax.f32 %v2267_v52, %v2271_v57  ;;  %v752_v59 = vpop.f32.mrb[18].mxu0 }
 0x391   : > { %v778_v60 = vmax.f32 %v742_v53, %v752_v59  ;;  %v2275_v61 = vpop.f32.mrb[19].mxu0 }
 0x392   : > { %v791_v62 = vmax.f32 %v2269_v54, %v2275_v61 }
 0x396   : > { %v758_v63 = vpop.f32.mrb[20].mxu0 }
 0x397   : > { %v779_v0 = vmax.f32 %v777_v56, %v758_v63  ;;  %v2279_v1 = vpop.f32.mrb[21].mxu0 }
 0x398   : > { %v792_v2 = vmax.f32 %v790_v58, %v2279_v1  ;;  %v762_v3 = vpop.f32.mrb[22].mxu0 }
 0x399   : > { %v780_v4 = vmax.f32 %v778_v60, %v762_v3  ;;  %v2282_v5 = vpop.f32.mrb[23].mxu0 }
 0x39a   : > { %v793_v6 = vmax.f32 %v791_v62, %v2282_v5 }
 0x39e   : > { %v768_v7 = vpop.f32.mrb[24].mxu0 }
 0x39f   : > { %v781_v8 = vmax.f32 %v779_v0, %v768_v7  ;;  %v770_v9 = vpop.f32.mrb[25].mxu0 }
 0x3a0   : > { %v794_v10 = vmax.f32 %v792_v2, %v770_v9  ;;  %v772_v12 = vpop.f32.mrb[26].mxu0 }
 0x3a1   : > { %v782_v13 = vmax.f32 %v780_v4, %v772_v12  ;;  %v774_v14 = vpop.f32.mrb[27].mxu0 }
 0x3a2   : > { %v795_v15 = vmax.f32 %v793_v6, %v774_v14 }
 0x3a3   : > { %v783_v16 = vmax.f32 %v781_v8, %v782_v13 }
 0x3a4   : > { %v796_v17 = vmax.f32 %v794_v10, %v795_v15 }
 0x3a5   : > { %v784_v18 = vrot.slane %v783_v16, 4 }
 0x3a6   : > { %v797_v19 = vrot.slane %v796_v17, 4 }
 0x3a7   : > { %v785_v20 = vmax.f32 %v783_v16, %v784_v18 }
 0x3a8   : > { %v798_v21 = vmax.f32 %v796_v17, %v797_v19 }
 0x3a9   : > { %v786_v22 = vrot.slane %v785_v20, 2 }
 0x3aa   : > { %v799_v23 = vrot.slane %v798_v21, 2 }
 0x3ab   : > { %v787_v24 = vmax.f32 %v785_v20, %v786_v22 }
 0x3ac   : > { %v800_v25 = vmax.f32 %v798_v21, %v799_v23 }
 0x3ad   : > { %v788_v26 = vrot.slane %v787_v24, 1 }
 0x3ae   : > { %v801_v27 = vrot.slane %v800_v25, 1 }
 0x3af   : > { %v789_v28 = vmax.f32 %v787_v24, %v788_v26 }
 0x3b0   : > { %v802_v29 = vmax.f32 %v800_v25, %v801_v27 }
 0x3b1   : > { %v803_v31 = vsub.f32 %v738_v51, %v789_v28  ;;  %v805_v33 = vsub.f32 %v742_v53, %v789_v28  ;;  %v807_v35 = vsub.f32 %v748_v55, %v789_v28  ;;  %v809_v37 = vsub.f32 %v752_v59, %v789_v28 }
 0x3b2   : > { %v811_v38 = vsub.f32 %v758_v63, %v789_v28  ;;  %v813_v34 = vsub.f32 %v762_v3, %v789_v28  ;;  %v815_v36 = vsub.f32 %v768_v7, %v789_v28  ;;  %v817_v40 = vsub.f32 %v772_v12, %v789_v28 }
 0x3b3   : > { %v819_v41 = vmul.f32 1.442695, %v803_v31  ;;  %v823_v39 = vmul.f32 1.442695, %v805_v33  ;;  %v827_v42 = vmul.f32 1.442695, %v807_v35  ;;  %v804_v43 = vsub.f32 %v2267_v52, %v802_v29 }
 0x3b4   : > { %v831_v44 = vmul.f32 1.442695, %v809_v37  ;;  %v806_v45 = vsub.f32 %v2269_v54, %v802_v29  ;;  %v835_v47 = vmul.f32 1.442695, %v811_v38  ;;  %v839_v49 = vmul.f32 1.442695, %v813_v34 }
 0x3b5   : > { %1832 = vpow2.f32 %v819_v41  ;;  %v808_v50 = vsub.f32 %v2271_v57, %v802_v29  ;;  %v810_v51 = vsub.f32 %v2275_v61, %v802_v29  ;;  %v812_v53 = vsub.f32 %v2279_v1, %v802_v29 }
 0x3b6   : > { %1834 = vpow2.f32 %v823_v39  ;;  %v814_v55 = vsub.f32 %v2282_v5, %v802_v29  ;;  %v843_v56 = vmul.f32 1.442695, %v815_v36  ;;  %v816_v58 = vsub.f32 %v770_v9, %v802_v29  ;;  %v1682_v39 = vld [vmem:[%s2464_s0 + $0x10] sm:$0xff] }
 0x3b7   : > { %1836 = vpow2.f32 %v827_v42  ;;  %v818_v59 = vsub.f32 %v774_v14, %v802_v29  ;;  %v847_v52 = vmul.f32 1.442695, %v817_v40  ;;  %v821_v54 = vmul.f32 1.442695, %v804_v43 }
 0x3b8   : > { %1838 = vpow2.f32 %v831_v44  ;;  %v825_v60 = vmul.f32 1.442695, %v806_v45  ;;  %v829_v62 = vmul.f32 1.442695, %v808_v50  ;;  %v833_v57 = vmul.f32 1.442695, %v810_v51  ;;  %v945_v50 = vpop.trf.xlu1 }
 0x3b9   : > { %1840 = vpow2.f32 %v835_v47  ;;  %v837_v61 = vmul.f32 1.442695, %v812_v53  ;;  %v841_v63 = vmul.f32 1.442695, %v814_v55  ;;  %v845_v1 = vmul.f32 1.442695, %v816_v58 }
 0x3ba   : > { %1842 = vpow2.f32 %v839_v49  ;;  %v849_v3 = vmul.f32 1.442695, %v818_v59  ;;  %v1684_v44 = vcombine.high %v1682_v39, %v1682_v39  ;;  %v1683_v45 = vcombine.low %v1682_v39, %v1682_v39 }
 0x3bb   : > { %1844 = vpow2.f32 %v843_v56  ;;  %v886_v47 = vrot.slane %v2221_v32, 4 }
 0x3bc   : > { %1846 = vpow2.f32 %v847_v52  ;;  %v971_v49 = vsel %vm423_vm1, %v1683_v45, 0  ;;  %v946_v51 = vpop.trf.xlu1 }
 0x3bd   : > { %1848 = vpow2.f32 %v821_v54 }
 0x3be   : > { %1850 = vpow2.f32 %v825_v60 }
 0x3bf   : > { %v1833_v0 = vpop.eup %1832  ;;  %1852 = vpow2.f32 %v829_v62 }
 0x3c0   : > { %v1835_v2 = vpop.eup %1834  ;;  %1854 = vpow2.f32 %v833_v57  ;;  %v947_v32 = vpop.trf.xlu1 }
 0x3c1   : > { %v1837_v4 = vpop.eup %1836  ;;  %v851_v5 = vadd.f32 %v1835_v2, %v1833_v0  ;;  %1856 = vpow2.f32 %v837_v61  ;;  %v877_v6 = vpack.c.bf16 %v1835_v2, %v1833_v0 }
 0x3c2   : > { %v1839_v7 = vpop.eup %1838  ;;  %1858 = vpow2.f32 %v841_v63 }
 0x3c3   : > { %v1841_v8 = vpop.eup %1840  ;;  %v852_v9 = vadd.f32 %v1837_v4, %v851_v5  ;;  %1860 = vpow2.f32 %v845_v1  ;;  %v879_v10 = vpack.c.bf16 %v1839_v7, %v1837_v4 }
 0x3c4   : > { %v1843_v12 = vpop.eup %1842  ;;  %1862 = vpow2.f32 %v849_v3  ;;  %v948_v53 = vpop.trf.xlu1 }
 0x3c5   : > { %v1845_v13 = vpop.eup %1844  ;;  %v853_v14 = vadd.f32 %v1839_v7, %v852_v9  ;;  %v881_v15 = vpack.c.bf16 %v1843_v12, %v1841_v8 }
 0x3c6   : > { %v1847_v16 = vpop.eup %1846 }
 0x3c7   : > { %v1849_v17 = vpop.eup %1848  ;;  %v854_v18 = vadd.f32 %v1841_v8, %v853_v14  ;;  %v883_v19 = vpack.c.bf16 %v1847_v16, %v1845_v13 }
 0x3c8   : > { %v1851_v20 = vpop.eup %1850 }
 0x3c9   : > { %v1853_v21 = vpop.eup %1852  ;;  %v855_v22 = vadd.f32 %v1843_v12, %v854_v18  ;;  %v864_v23 = vadd.f32 %v1851_v20, %v1849_v17  ;;  %v878_v24 = vpack.c.bf16 %v1851_v20, %v1849_v17 }
 0x3ca   : > { %v1855_v25 = vpop.eup %1854 }
 0x3cb   : > { %v1857_v26 = vpop.eup %1856  ;;  %v856_v27 = vadd.f32 %v1845_v13, %v855_v22  ;;  %v865_v28 = vadd.f32 %v1853_v21, %v864_v23  ;;  %890 = vmatprep.subr.bf16.mxu1 %v878_v24  ;;  %v880_v29 = vpack.c.bf16 %v1855_v25, %v1853_v21 }
 0x3cc   : > { %v1859_v31 = vpop.eup %1858  ;;  %891 = vmatpush1.bf16.msra.mxu1 %v877_v6 }
 0x3cd   : > { %v1861_v33 = vpop.eup %1860  ;;  %v857_v35 = vadd.f32 %v1847_v16, %v856_v27  ;;  %v866_v37 = vadd.f32 %v1855_v25, %v865_v28  ;;  %892 = vmatprep.subr.bf16.mxu1 %v880_v29  ;;  %v882_v38 = vpack.c.bf16 %v1859_v31, %v1857_v26 }
 0x3ce   : > { %v1863_v34 = vpop.eup %1862 }
 0x3cf   : > { %v867_v36 = vadd.f32 %v1857_v26, %v866_v37  ;;  %v884_v40 = vpack.c.bf16 %v1863_v34, %v1861_v33  ;;  %v858_v55 = vrot.slane %v857_v35, 4 }
 0x3d0   : > { %893 = vmatpush1.bf16.msra.mxu1 %v879_v10 }
 0x3d1   : > { %v868_v41 = vadd.f32 %v1859_v31, %v867_v36  ;;  %894 = vmatprep.subr.bf16.mxu1 %v882_v38  ;;  %v859_v58 = vadd.f32 %v858_v55, %v857_v35 }
 0x3d3   : > { %v869_v42 = vadd.f32 %v1861_v33, %v868_v41  ;;  %v860_v52 = vrot.slane %v859_v58, 2 }
 0x3d4   : > { %895 = vmatpush1.bf16.msra.mxu1 %v881_v15 }
 0x3d5   : > { %v870_v43 = vadd.f32 %v1863_v34, %v869_v42  ;;  %896 = vmatprep.subr.bf16.mxu1 %v884_v40  ;;  %v861_v60 = vadd.f32 %v860_v52, %v859_v58 }
 0x3d7   : > { %v871_v56 = vrot.slane %v870_v43, 4  ;;  %v862_v57 = vrot.slane %v861_v60, 1 }
 0x3d8   : > { %897 = vmatpush1.bf16.msra.mxu1 %v883_v19 }
 0x3d9   : > { %1685 = vmatprep.subr.msk.bf16.mxu1 %vm423_vm1, %v1684_v44  ;;  %v872_v59 = vadd.f32 %v871_v56, %v870_v43  ;;  %v863_v63 = vadd.f32 %v862_v57, %v861_v60 }
 0x3db   : > { %1681 = vmatmul.mubr.msk.bf16.vlgmr.msra.gmra.mrb[16].mxu1 %vm611_vm3, %v886_v47  ;;  %v873_v54 = vrot.slane %v872_v59, 2  ;;  %1864 = vrcp.f32 %v863_v63 }
 0x3dc   : > { %977 = vmatpush1.bf16.msra.mxu1 %v971_v49  ;;  %1008 = vmatprep.mubr.bf16.mxu1 %v2041_v11 }
 0x3dd   : > { %v874_v62 = vadd.f32 %v873_v54, %v872_v59 }
 0x3df   : > { %v875_v61 = vrot.slane %v874_v62, 1 }
 0x3e1   : > { %v876_v0 = vadd.f32 %v875_v61, %v874_v62 }
 0x3e3   : > { %1686 = vmatmul.mubr.msk.bf16.vlgmr.msra.gmra.mrb[20].mxu1 %vm410_vm2, %v945_v50  ;;  %1866 = vrcp.f32 %v876_v0 }
 0x3e4   : > { %1018 = vmatprep.mubr.bf16.mxu1 %v2041_v11 }
 0x3e5   : > { %v1865_v1 = vpop.eup %1864 }
 0x3eb   : > { %1687 = vmatmul.mubr.msk.bf16.gmra.mrb[24].mxu1 %vm410_vm2, %v946_v51 }
 0x3ec   : > { %1028 = vmatprep.mubr.bf16.mxu1 %v2041_v11 }
 0x3ed   : > { %v1867_v3 = vpop.eup %1866 }
 0x3f3   : > { %1688 = vmatmul.mubr.msk.bf16.gmra.mrb[28].mxu1 %vm410_vm2, %v947_v32 }
 0x3f4   : > { %1038 = vmatprep.mubr.bf16.mxu1 %v2041_v11 }
 0x3fb   : > { %1689 = vmatmul.mubr.msk.bf16.gmra.mrb[32].mxu1 %vm410_vm2, %v948_v53 }
 0x3fc   : > { %1467 = vmatprep.mubr.bf16.mxu1 %v2041_v11 }
 0x4ae   : > { %v924_v2 = vpop.f32.mrb[16].mxu1 }
 0x4af   : > { %v2307_v4 = vmul.f32 %v1865_v1, %v924_v2  ;;  %v926_v5 = vpop.f32.mrb[17].mxu1 }
 0x4b0   : > { %v2309_v6 = vmul.f32 %v1867_v3, %v926_v5  ;;  %v928_v7 = vpop.f32.mrb[18].mxu1 }
 0x4b1   : > { %v1480_v8 = vpack.c.bf16 %v2307_v4, %v2263_v46  ;;  %v929_v9 = vpop.f32.mrb[19].mxu1  ;;  %v259_v46 = vld [vmem:[%s2468_s4 + $0x18] sm:$0xff] }
 0x4b2   : > { %v1481_v10 = vpack.c.bf16 %v2309_v6, %v2265_v48  ;;  %v258_v48 = vld [vmem:[%s2468_s4 + $0x10] sm:$0xff] }
 0x4b6   : > { %v1010_v12 = vpop.f32.mrb[20].mxu1 }
 0x4b7   : > { %v2315_v13 = vpop.f32.mrb[21].mxu1 }
 0x4b8   : > { %v1014_v14 = vpop.f32.mrb[22].mxu1 }
 0x4b9   : > { %v2317_v15 = vpop.f32.mrb[23].mxu1 }
 0x4be   : > { %v1020_v16 = vpop.f32.mrb[24].mxu1 }
 0x4bf   : > { %v1049_v17 = vmax.f32 %v1010_v12, %v1020_v16  ;;  %v2319_v18 = vpop.f32.mrb[25].mxu1 }
 0x4c0   : > { %v1062_v19 = vmax.f32 %v2315_v13, %v2319_v18  ;;  %v1024_v20 = vpop.f32.mrb[26].mxu1 }
 0x4c1   : > { %v1050_v21 = vmax.f32 %v1014_v14, %v1024_v20  ;;  %v2323_v22 = vpop.f32.mrb[27].mxu1 }
 0x4c2   : > { %v1063_v23 = vmax.f32 %v2317_v15, %v2323_v22 }
 0x4c6   : > { %v1030_v24 = vpop.f32.mrb[28].mxu1 }
 0x4c7   : > { %v1051_v25 = vmax.f32 %v1049_v17, %v1030_v24  ;;  %v2327_v26 = vpop.f32.mrb[29].mxu1 }
 0x4c8   : > { %v1064_v27 = vmax.f32 %v1062_v19, %v2327_v26  ;;  %v1034_v28 = vpop.f32.mrb[30].mxu1 }
 0x4c9   : > { %v1052_v29 = vmax.f32 %v1050_v21, %v1034_v28  ;;  %v2330_v31 = vpop.f32.mrb[31].mxu1 }
 0x4ca   : > { %v1065_v33 = vmax.f32 %v1063_v23, %v2330_v31 }
 0x4ce   : > { %v1040_v35 = vpop.f32.mrb[32].mxu1 }
 0x4cf   : > { %v1053_v37 = vmax.f32 %v1051_v25, %v1040_v35  ;;  %v1042_v38 = vpop.f32.mrb[33].mxu1 }
 0x4d0   : > { %v1066_v34 = vmax.f32 %v1064_v27, %v1042_v38  ;;  %v1044_v36 = vpop.f32.mrb[34].mxu1 }
 0x4d1   : > { %v1054_v40 = vmax.f32 %v1052_v29, %v1044_v36  ;;  %v1046_v41 = vpop.f32.mrb[35].mxu1 }
 0x4d2   : > { %v1067_v39 = vmax.f32 %v1065_v33, %v1046_v41 }
 0x4d3   : > { %v1055_v42 = vmax.f32 %v1053_v37, %v1054_v40 }
 0x4d4   : > { %v1068_v43 = vmax.f32 %v1066_v34, %v1067_v39 }
 0x4d5   : > { %v1056_v44 = vrot.slane %v1055_v42, 4 }
 0x4d6   : > { %v1069_v45 = vrot.slane %v1068_v43, 4 }
 0x4d7   : > { %v1057_v47 = vmax.f32 %v1055_v42, %v1056_v44 }
 0x4d8   : > { %v1070_v49 = vmax.f32 %v1068_v43, %v1069_v45 }
 0x4d9   : > { %v1058_v50 = vrot.slane %v1057_v47, 2 }
 0x4da   : > { %v1071_v51 = vrot.slane %v1070_v49, 2 }
 0x4db   : > { %v1059_v32 = vmax.f32 %v1057_v47, %v1058_v50 }
 0x4dc   : > { %v1072_v53 = vmax.f32 %v1070_v49, %v1071_v51 }
 0x4dd   : > { %v1060_v55 = vrot.slane %v1059_v32, 1 }
 0x4de   : > { %v1073_v56 = vrot.slane %v1072_v53, 1 }
 0x4df   : > { %v1061_v58 = vmax.f32 %v1059_v32, %v1060_v55 }
 0x4e0   : > { %v1074_v59 = vmax.f32 %v1072_v53, %v1073_v56 }
 0x4e1   : > { %v1075_v52 = vsub.f32 %v1010_v12, %v1061_v58  ;;  %v1077_v54 = vsub.f32 %v1014_v14, %v1061_v58  ;;  %v1079_v60 = vsub.f32 %v1020_v16, %v1061_v58  ;;  %v1081_v62 = vsub.f32 %v1024_v20, %v1061_v58 }
 0x4e2   : > { %v1083_v57 = vsub.f32 %v1030_v24, %v1061_v58  ;;  %v1085_v61 = vsub.f32 %v1034_v28, %v1061_v58  ;;  %v1087_v63 = vsub.f32 %v1040_v35, %v1061_v58  ;;  %v1089_v0 = vsub.f32 %v1044_v36, %v1061_v58 }
 0x4e3   : > { %v1091_v1 = vmul.f32 1.442695, %v1075_v52  ;;  %v1095_v2 = vmul.f32 1.442695, %v1077_v54  ;;  %v1099_v3 = vmul.f32 1.442695, %v1079_v60  ;;  %v1076_v5 = vsub.f32 %v2315_v13, %v1074_v59 }
 0x4e4   : > { %v1103_v7 = vmul.f32 1.442695, %v1081_v62  ;;  %v1078_v9 = vsub.f32 %v2317_v15, %v1074_v59  ;;  %v1107_v17 = vmul.f32 1.442695, %v1083_v57  ;;  %v1111_v19 = vmul.f32 1.442695, %v1085_v61 }
 0x4e5   : > { %1868 = vpow2.f32 %v1091_v1  ;;  %v1080_v12 = vsub.f32 %v2319_v18, %v1074_v59  ;;  %v1082_v14 = vsub.f32 %v2323_v22, %v1074_v59  ;;  %v1084_v16 = vsub.f32 %v2327_v26, %v1074_v59 }
 0x4e6   : > { %1870 = vpow2.f32 %v1095_v2  ;;  %v1086_v20 = vsub.f32 %v2330_v31, %v1074_v59  ;;  %v1115_v21 = vmul.f32 1.442695, %v1087_v63  ;;  %v1088_v23 = vsub.f32 %v1042_v38, %v1074_v59 }
 0x4e7   : > { %1872 = vpow2.f32 %v1099_v3  ;;  %v1090_v24 = vsub.f32 %v1046_v41, %v1074_v59  ;;  %v1119_v13 = vmul.f32 1.442695, %v1089_v0  ;;  %v1093_v15 = vmul.f32 1.442695, %v1076_v5 }
 0x4e8   : > { %1874 = vpow2.f32 %v1103_v7  ;;  %v1097_v25 = vmul.f32 1.442695, %v1078_v9  ;;  %v1101_v27 = vmul.f32 1.442695, %v1080_v12  ;;  %v1105_v18 = vmul.f32 1.442695, %v1082_v14 }
 0x4e9   : > { %1876 = vpow2.f32 %v1107_v17  ;;  %v1109_v22 = vmul.f32 1.442695, %v1084_v16  ;;  %v1113_v26 = vmul.f32 1.442695, %v1086_v20  ;;  %v1117_v29 = vmul.f32 1.442695, %v1088_v23  ;;  %v1218_v16 = vpop.trf.xlu1 }
 0x4ea   : > { %1878 = vpow2.f32 %v1111_v19  ;;  %v1121_v33 = vmul.f32 1.442695, %v1090_v24  ;;  %v1691_v7 = vld [vmem:[%s2464_s0 + $0x18] sm:$0xff] }
 0x4eb   : > { %1880 = vpow2.f32 %v1115_v21  ;;  %v1693_v19 = vcombine.high %v1691_v7, %v1691_v7  ;;  %v1692_v12 = vcombine.low %v1691_v7, %v1691_v7 }
 0x4ec   : > { %1882 = vpow2.f32 %v1119_v13 }
 0x4ed   : > { %1884 = vpow2.f32 %v1093_v15  ;;  %v1244_v14 = vsel %vm423_vm1, %v1692_v12, 0  ;;  %v1219_v20 = vpop.trf.xlu1 }
 0x4ee   : > { %1886 = vpow2.f32 %v1097_v25 }
 0x4ef   : > { %v1869_v28 = vpop.eup %1868  ;;  %1888 = vpow2.f32 %v1101_v27 }
 0x4f0   : > { %v1871_v31 = vpop.eup %1870  ;;  %1890 = vpow2.f32 %v1105_v18 }
 0x4f1   : > { %v1873_v35 = vpop.eup %1872  ;;  %v1123_v37 = vadd.f32 %v1871_v31, %v1869_v28  ;;  %1892 = vpow2.f32 %v1109_v22  ;;  %v1149_v38 = vpack.c.bf16 %v1871_v31, %v1869_v28  ;;  %v1220_v21 = vpop.trf.xlu1 }
 0x4f2   : > { %v1875_v34 = vpop.eup %1874  ;;  %1894 = vpow2.f32 %v1113_v26 }
 0x4f3   : > { %v1877_v36 = vpop.eup %1876  ;;  %v1124_v40 = vadd.f32 %v1873_v35, %v1123_v37  ;;  %1896 = vpow2.f32 %v1117_v29  ;;  %v1151_v41 = vpack.c.bf16 %v1875_v34, %v1873_v35 }
 0x4f4   : > { %v1879_v39 = vpop.eup %1878  ;;  %1898 = vpow2.f32 %v1121_v33 }
 0x4f5   : > { %v1881_v42 = vpop.eup %1880  ;;  %v1125_v43 = vadd.f32 %v1875_v34, %v1124_v40  ;;  %v1153_v44 = vpack.c.bf16 %v1879_v39, %v1877_v36  ;;  %v1221_v23 = vpop.trf.xlu1 }
 0x4f6   : > { %v1883_v45 = vpop.eup %1882 }
 0x4f7   : > { %v1885_v47 = vpop.eup %1884  ;;  %v1126_v49 = vadd.f32 %v1877_v36, %v1125_v43  ;;  %v1155_v50 = vpack.c.bf16 %v1883_v45, %v1881_v42 }
 0x4f8   : > { %v1887_v51 = vpop.eup %1886 }
 0x4f9   : > { %v1889_v32 = vpop.eup %1888  ;;  %v1127_v53 = vadd.f32 %v1879_v39, %v1126_v49  ;;  %v1136_v55 = vadd.f32 %v1887_v51, %v1885_v47  ;;  %v1150_v56 = vpack.c.bf16 %v1887_v51, %v1885_v47 }
 0x4fa   : > { %v1891_v58 = vpop.eup %1890 }
 0x4fb   : > { %v1893_v59 = vpop.eup %1892  ;;  %v1128_v52 = vadd.f32 %v1881_v42, %v1127_v53  ;;  %v1137_v54 = vadd.f32 %v1889_v32, %v1136_v55  ;;  %1160 = vmatprep.subr.bf16.mxu0 %v1150_v56  ;;  %v1152_v60 = vpack.c.bf16 %v1891_v58, %v1889_v32 }
 0x4fc   : > { %v1895_v62 = vpop.eup %1894  ;;  %1161 = vmatpush1.bf16.msra.mxu0 %v1149_v38 }
 0x4fd   : > { %v1897_v57 = vpop.eup %1896  ;;  %v1129_v61 = vadd.f32 %v1883_v45, %v1128_v52  ;;  %v1138_v63 = vadd.f32 %v1891_v58, %v1137_v54  ;;  %1162 = vmatprep.subr.bf16.mxu0 %v1152_v60  ;;  %v1154_v0 = vpack.c.bf16 %v1895_v62, %v1893_v59 }
 0x4fe   : > { %v1899_v1 = vpop.eup %1898 }
 0x4ff   : > { %v1139_v2 = vadd.f32 %v1893_v59, %v1138_v63  ;;  %v1156_v3 = vpack.c.bf16 %v1899_v1, %v1897_v57  ;;  %v1130_v24 = vrot.slane %v1129_v61, 4 }
 0x500   : > { %1163 = vmatpush1.bf16.msra.mxu0 %v1151_v41 }
 0x501   : > { %v1140_v5 = vadd.f32 %v1895_v62, %v1139_v2  ;;  %1164 = vmatprep.subr.bf16.mxu0 %v1154_v0  ;;  %v1131_v15 = vadd.f32 %v1130_v24, %v1129_v61 }
 0x503   : > { %v1141_v9 = vadd.f32 %v1897_v57, %v1140_v5  ;;  %v1132_v27 = vrot.slane %v1131_v15, 2 }
 0x504   : > { %1165 = vmatpush1.bf16.msra.mxu0 %v1153_v44 }
 0x505   : > { %v1142_v17 = vadd.f32 %v1899_v1, %v1141_v9  ;;  %1166 = vmatprep.subr.bf16.mxu0 %v1156_v3  ;;  %v1133_v22 = vadd.f32 %v1132_v27, %v1131_v15 }
 0x507   : > { %v1143_v13 = vrot.slane %v1142_v17, 4  ;;  %v1134_v28 = vrot.slane %v1133_v22, 1 }
 0x508   : > { %1167 = vmatpush1.bf16.msra.mxu0 %v1155_v50 }
 0x509   : > { %1694 = vmatprep.subr.msk.bf16.mxu0 %vm423_vm1, %v1693_v19  ;;  %v1144_v25 = vadd.f32 %v1143_v13, %v1142_v17  ;;  %v1135_v31 = vadd.f32 %v1134_v28, %v1133_v22 }
 0x50b   : > { %1690 = vmatmul.mubr.msk.bf16.vlgmr.msra.gmra.mrb[28].mxu0 %vm611_vm3, %v2219_v30  ;;  %v1145_v18 = vrot.slane %v1144_v25, 2  ;;  %1900 = vrcp.f32 %v1135_v31 }
 0x50c   : > { %1250 = vmatpush1.bf16.msra.mxu0 %v1244_v14  ;;  %1281 = vmatprep.mubr.bf16.mxu0 %v2041_v11 }
 0x50d   : > { %v1146_v26 = vadd.f32 %v1145_v18, %v1144_v25 }
 0x50f   : > { %v1147_v29 = vrot.slane %v1146_v26, 1 }
 0x511   : > { %v1148_v33 = vadd.f32 %v1147_v29, %v1146_v26 }
 0x513   : > { %1695 = vmatmul.mubr.msk.bf16.vlgmr.msra.gmra.mrb[32].mxu0 %vm410_vm2, %v1218_v16  ;;  %1902 = vrcp.f32 %v1148_v33 }
 0x514   : > { %1291 = vmatprep.mubr.bf16.mxu0 %v2041_v11 }
 0x515   : > { %v1901_v35 = vpop.eup %1900 }
 0x51b   : > { %1696 = vmatmul.mubr.msk.bf16.gmra.mrb[36].mxu0 %vm410_vm2, %v1219_v20 }
 0x51c   : > { %1301 = vmatprep.mubr.bf16.mxu0 %v2041_v11 }
 0x51d   : > { %v1903_v38 = vpop.eup %1902 }
 0x523   : > { %1697 = vmatmul.mubr.msk.bf16.gmra.mrb[40].mxu0 %vm410_vm2, %v1220_v21 }
 0x524   : > { %1311 = vmatprep.mubr.bf16.mxu0 %v2041_v11 }
 0x52b   : > { %1698 = vmatmul.mubr.msk.bf16.gmra.mrb[44].mxu0 %vm410_vm2, %v1221_v23 }
 0x5de   : > { %v1194_v37 = vpop.f32.mrb[28].mxu0 }
 0x5df   : > { %v2354_v34 = vmul.f32 %v1901_v35, %v1194_v37  ;;  %v1196_v36 = vpop.f32.mrb[29].mxu0 }
 0x5e0   : > { %v2356_v40 = vmul.f32 %v1903_v38, %v1196_v36  ;;  %v1198_v41 = vpop.f32.mrb[30].mxu0 }
 0x5e1   : > { %v1199_v39 = vpop.f32.mrb[31].mxu0 }
 0x5e6   : > { %v1283_v42 = vpop.f32.mrb[32].mxu0 }
 0x5e7   : > { %v2358_v43 = vpop.f32.mrb[33].mxu0 }
 0x5e8   : > { %v1287_v44 = vpop.f32.mrb[34].mxu0 }
 0x5e9   : > { %v2360_v45 = vpop.f32.mrb[35].mxu0 }
 0x5ee   : > { %v1293_v47 = vpop.f32.mrb[36].mxu0 }
 0x5ef   : > { %v1322_v49 = vmax.f32 %v1283_v42, %v1293_v47  ;;  %v2362_v50 = vpop.f32.mrb[37].mxu0 }
 0x5f0   : > { %v1335_v51 = vmax.f32 %v2358_v43, %v2362_v50  ;;  %v1297_v32 = vpop.f32.mrb[38].mxu0 }
 0x5f1   : > { %v1323_v53 = vmax.f32 %v1287_v44, %v1297_v32  ;;  %v2366_v55 = vpop.f32.mrb[39].mxu0 }
 0x5f2   : > { %v1336_v56 = vmax.f32 %v2360_v45, %v2366_v55 }
 0x5f6   : > { %v1303_v58 = vpop.f32.mrb[40].mxu0 }
 0x5f7   : > { %v1324_v59 = vmax.f32 %v1322_v49, %v1303_v58  ;;  %v2370_v52 = vpop.f32.mrb[41].mxu0 }
 0x5f8   : > { %v1337_v54 = vmax.f32 %v1335_v51, %v2370_v52  ;;  %v1307_v60 = vpop.f32.mrb[42].mxu0 }
 0x5f9   : > { %v1325_v62 = vmax.f32 %v1323_v53, %v1307_v60  ;;  %v2373_v57 = vpop.f32.mrb[43].mxu0 }
 0x5fa   : > { %v1338_v61 = vmax.f32 %v1336_v56, %v2373_v57 }
 0x5fe   : > { %v1313_v63 = vpop.f32.mrb[44].mxu0 }
 0x5ff   : > { %v1326_v0 = vmax.f32 %v1324_v59, %v1313_v63  ;;  %v1315_v1 = vpop.f32.mrb[45].mxu0 }
 0x600   : > { %v1339_v2 = vmax.f32 %v1337_v54, %v1315_v1  ;;  %v1317_v3 = vpop.f32.mrb[46].mxu0 }
 0x601   : > { %v1327_v5 = vmax.f32 %v1325_v62, %v1317_v3  ;;  %v1319_v7 = vpop.f32.mrb[47].mxu0 }
 0x602   : > { %v1340_v9 = vmax.f32 %v1338_v61, %v1319_v7 }
 0x603   : > { %v1328_v17 = vmax.f32 %v1326_v0, %v1327_v5 }
 0x604   : > { %v1341_v19 = vmax.f32 %v1339_v2, %v1340_v9 }
 0x605   : > { %v1329_v12 = vrot.slane %v1328_v17, 4 }
 0x606   : > { %v1342_v14 = vrot.slane %v1341_v19, 4 }
 0x607   : > { %v1330_v16 = vmax.f32 %v1328_v17, %v1329_v12 }
 0x608   : > { %v1343_v20 = vmax.f32 %v1341_v19, %v1342_v14 }
 0x609   : > { %v1331_v21 = vrot.slane %v1330_v16, 2 }
 0x60a   : > { %v1344_v23 = vrot.slane %v1343_v20, 2 }
 0x60b   : > { %v1332_v24 = vmax.f32 %v1330_v16, %v1331_v21 }
 0x60c   : > { %v1345_v13 = vmax.f32 %v1343_v20, %v1344_v23 }
 0x60d   : > { %v1333_v15 = vrot.slane %v1332_v24, 1 }
 0x60e   : > { %v1346_v25 = vrot.slane %v1345_v13, 1 }
 0x60f   : > { %v1334_v27 = vmax.f32 %v1332_v24, %v1333_v15 }
 0x610   : > { %v1347_v18 = vmax.f32 %v1345_v13, %v1346_v25 }
 0x611   : > { %v1348_v22 = vsub.f32 %v1283_v42, %v1334_v27  ;;  %v1350_v26 = vsub.f32 %v1287_v44, %v1334_v27  ;;  %v1352_v28 = vsub.f32 %v1293_v47, %v1334_v27  ;;  %v1354_v29 = vsub.f32 %v1297_v32, %v1334_v27 }
 0x612   : > { %v1356_v31 = vsub.f32 %v1303_v58, %v1334_v27  ;;  %v1358_v33 = vsub.f32 %v1307_v60, %v1334_v27  ;;  %v1360_v35 = vsub.f32 %v1313_v63, %v1334_v27  ;;  %v1362_v37 = vsub.f32 %v1317_v3, %v1334_v27 }
 0x613   : > { %v1364_v38 = vmul.f32 1.442695, %v1348_v22  ;;  %v1368_v36 = vmul.f32 1.442695, %v1350_v26  ;;  %v1372_v41 = vmul.f32 1.442695, %v1352_v28  ;;  %v1349_v39 = vsub.f32 %v2358_v43, %v1347_v18 }
 0x614   : > { %v1376_v49 = vmul.f32 1.442695, %v1354_v29  ;;  %v1351_v51 = vsub.f32 %v2360_v45, %v1347_v18  ;;  %v1380_v53 = vmul.f32 1.442695, %v1356_v31  ;;  %v1384_v56 = vmul.f32 1.442695, %v1358_v33 }
 0x615   : > { %1904 = vpow2.f32 %v1364_v38  ;;  %v1353_v42 = vsub.f32 %v2362_v50, %v1347_v18  ;;  %v1355_v44 = vsub.f32 %v2366_v55, %v1347_v18  ;;  %v1357_v47 = vsub.f32 %v2370_v52, %v1347_v18 }
 0x616   : > { %1906 = vpow2.f32 %v1368_v36  ;;  %v1359_v32 = vsub.f32 %v2373_v57, %v1347_v18  ;;  %v1388_v58 = vmul.f32 1.442695, %v1360_v35  ;;  %v1361_v59 = vsub.f32 %v1315_v1, %v1347_v18 }
 0x617   : > { %1908 = vpow2.f32 %v1372_v41  ;;  %v1363_v54 = vsub.f32 %v1319_v7, %v1347_v18  ;;  %v1392_v43 = vmul.f32 1.442695, %v1362_v37  ;;  %v1366_v45 = vmul.f32 1.442695, %v1349_v39 }
 0x618   : > { %1910 = vpow2.f32 %v1376_v49  ;;  %v1370_v60 = vmul.f32 1.442695, %v1351_v51  ;;  %v1374_v62 = vmul.f32 1.442695, %v1353_v42  ;;  %v1378_v50 = vmul.f32 1.442695, %v1355_v44 }
 0x619   : > { %1912 = vpow2.f32 %v1380_v53  ;;  %v1382_v55 = vmul.f32 1.442695, %v1357_v47  ;;  %v1386_v52 = vmul.f32 1.442695, %v1359_v32  ;;  %v1390_v57 = vmul.f32 1.442695, %v1361_v59 }
 0x61a   : > { %1914 = vpow2.f32 %v1384_v56  ;;  %v1394_v0 = vmul.f32 1.442695, %v1363_v54  ;;  %v1431_v42 = vrot.slane %v2219_v30, 4  ;;  %v257_v44 = vld [vmem:[%s2468_s4 + $0x8] sm:$0xff]  ;;  %v256_v30 = vld [vmem:[%s2468_s4] sm:$0xff] }
 0x61b   : > { %1916 = vpow2.f32 %v1388_v58  ;;  %267 = vperm.xlu1 %1781, %v257_v44   ;;  %262 = vperm.xlu0 %1780, %v256_v30  }
 0x61c   : > { %1918 = vpow2.f32 %v1392_v43 }
 0x61d   : > { %1920 = vpow2.f32 %v1366_v45 }
 0x61e   : > { %1922 = vpow2.f32 %v1370_v60 }
 0x61f   : > { %v1905_v61 = vpop.eup %1904  ;;  %1924 = vpow2.f32 %v1374_v62  ;;  %272 = vperm.xlu1 %1781, %v258_v48  }
 0x620   : > { %v1907_v63 = vpop.eup %1906  ;;  %1926 = vpow2.f32 %v1378_v50 }
 0x621   : > { %v1909_v1 = vpop.eup %1908  ;;  %v1396_v2 = vadd.f32 %v1907_v63, %v1905_v61  ;;  %1928 = vpow2.f32 %v1382_v55  ;;  %v1422_v3 = vpack.c.bf16 %v1907_v63, %v1905_v61 }
 0x622   : > { %v1911_v5 = vpop.eup %1910  ;;  %1930 = vpow2.f32 %v1386_v52 }
 0x623   : > { %v1913_v7 = vpop.eup %1912  ;;  %v1397_v9 = vadd.f32 %v1909_v1, %v1396_v2  ;;  %1932 = vpow2.f32 %v1390_v57  ;;  %v1424_v17 = vpack.c.bf16 %v1911_v5, %v1909_v1  ;;  %277 = vperm.xlu1 %1781, %v259_v46  }
 0x624   : > { %v1915_v19 = vpop.eup %1914  ;;  %1934 = vpow2.f32 %v1394_v0 }
 0x625   : > { %v1917_v12 = vpop.eup %1916  ;;  %v1398_v14 = vadd.f32 %v1911_v5, %v1397_v9  ;;  %v1426_v16 = vpack.c.bf16 %v1915_v19, %v1913_v7  ;;  %v1795_v5 = vld [vmem:[%s2467_s3 + $0x8] sm:$0xff]  }
 0x626   : > { %v1919_v20 = vpop.eup %1918 }
 0x627   : > { %v1921_v21 = vpop.eup %1920  ;;  %v1399_v23 = vadd.f32 %v1913_v7, %v1398_v14  ;;  %v1428_v24 = vpack.c.bf16 %v1919_v20, %v1917_v12 }
 0x628   : > { %v1923_v13 = vpop.eup %1922 }
 0x629   : > { %v1925_v15 = vpop.eup %1924  ;;  %v1400_v25 = vadd.f32 %v1915_v19, %v1399_v23  ;;  %v1409_v27 = vadd.f32 %v1923_v13, %v1921_v21  ;;  %v1423_v18 = vpack.c.bf16 %v1923_v13, %v1921_v21 }
 0x62a   : > { %v1927_v22 = vpop.eup %1926 }
 0x62b   : > { %v1929_v26 = vpop.eup %1928  ;;  %v1401_v28 = vadd.f32 %v1917_v12, %v1400_v25  ;;  %v1410_v29 = vadd.f32 %v1925_v15, %v1409_v27  ;;  %1435 = vmatprep.subr.bf16.mxu1 %v1423_v18  ;;  %v1425_v31 = vpack.c.bf16 %v1927_v22, %v1925_v15 }
 0x62c   : > { %v1931_v33 = vpop.eup %1930  ;;  %1436 = vmatpush1.bf16.msra.mxu1 %v1422_v3  ;;  %v1794_v3 = vld [vmem:[%s2467_s3] sm:$0xff]  }
 0x62d   : > { %v1933_v35 = vpop.eup %1932  ;;  %v1402_v37 = vadd.f32 %v1919_v20, %v1401_v28  ;;  %v1411_v38 = vadd.f32 %v1927_v22, %v1410_v29  ;;  %1437 = vmatprep.subr.bf16.mxu1 %v1425_v31  ;;  %v1427_v36 = vpack.c.bf16 %v1931_v33, %v1929_v26 }
 0x62e   : > { %v1935_v41 = vpop.eup %1934 }
 0x62f   : > { %v1412_v39 = vadd.f32 %v1929_v26, %v1411_v38  ;;  %v1429_v49 = vpack.c.bf16 %v1935_v41, %v1933_v35  ;;  %v1403_v4 = vrot.slane %v1402_v37, 4 }
 0x630   : > { %1438 = vmatpush1.bf16.msra.mxu1 %v1424_v17 }
 0x631   : > { %v1413_v51 = vadd.f32 %v1931_v33, %v1412_v39  ;;  %1439 = vmatprep.subr.bf16.mxu1 %v1427_v36 }
 0x633   : > { %v1414_v53 = vadd.f32 %v1933_v35, %v1413_v51 }
 0x634   : > { %1440 = vmatpush1.bf16.msra.mxu1 %v1426_v16 }
 0x635   : > { %v1415_v56 = vadd.f32 %v1935_v41, %v1414_v53  ;;  %1441 = vmatprep.subr.bf16.mxu1 %v1429_v49 }
 0x637   : > { %v1416_v6 = vrot.slane %v1415_v56, 4 }
 0x638   : > { %1442 = vmatpush1.bf16.msra.mxu1 %v1428_v24 }
 0x639   : > { %1500 = vmatprep.subr.bf16.mxu1 %v1481_v10  ;;  %v1417_v10 = vadd.f32 %v1416_v6, %v1415_v56 }
 0x63b   : > { %1699 = vmatmul.mubr.msk.bf16.vlgmr.msra.gmra.mrb[36].mxu1 %vm611_vm3, %v1431_v42  ;;  %v1418_v32 = vrot.slane %v1417_v10, 2 }
 0x63c   : > { %1501 = vmatpush1.bf16.msra.mxu1 %v1480_v8  ;;  %1532 = vmatprep.mubr.bf16.mxu1 %v2041_v11  ;;  %v1404_v8 = vadd.f32 %v1403_v4, %v1402_v37 }
 0x63d   : > { %v1419_v59 = vadd.f32 %v1418_v32, %v1417_v10 }
 0x63e   : > { %v1405_v47 = vrot.slane %v1404_v8, 2 }
 0x63f   : > { %v1420_v43 = vrot.slane %v1419_v59, 1 }
 0x640   : > { %v1406_v58 = vadd.f32 %v1405_v47, %v1404_v8 }
 0x641   : > { %v1421_v60 = vadd.f32 %v1420_v43, %v1419_v59 }
 0x642   : > { %v1407_v54 = vrot.slane %v1406_v58, 1 }
 0x644   : > { %v1408_v45 = vadd.f32 %v1407_v54, %v1406_v58 }
 0x646   : > { %1936 = vrcp.f32 %v1408_v45 }
 0x647   : > { %1938 = vrcp.f32 %v1421_v60 }
 0x650   : > { %v1937_v62 = vpop.eup %1936 }
 0x651   : > { %v1939_v55 = vpop.eup %1938 }
 0x69a   : > { %v263_v7 = vpop.permute.xlu0 %262 }
 0x70e   : > { %v1469_v50 = vpop.f32.mrb[36].mxu1 }
 0x70f   : > { %v1478_v52 = vmul.f32 %v1937_v62, %v1469_v50  ;;  %v1471_v61 = vpop.f32.mrb[37].mxu1 }
 0x710   : > { %v1479_v57 = vmul.f32 %v1939_v55, %v1471_v61  ;;  %v1473_v63 = vpop.f32.mrb[38].mxu1 }
 0x711   : > { %v1482_v0 = vpack.c.bf16 %v1478_v52, %v2354_v34  ;;  %v1474_v1 = vpop.f32.mrb[39].mxu1  ;;  %v268_v34 = vpop.permute.xlu1 %267 }
 0x712   : > { %v1483_v2 = vpack.c.bf16 %v1479_v57, %v2356_v40 }
 0x714   : > { %1502 = vmatprep.subr.bf16.mxu1 %v1483_v2 }
 0x715   : > { %1503 = vmatpush1.bf16.msra.mxu1 %v1482_v0 }
 0x718   : > { %1702 = vmatmul.mubr.msk.bf16.vlgmr.msra.gmra.mrb[40].mxu1 %vm306_vm0, %v1794_v3 }
 0x719   : > { %1542 = vmatprep.mubr.bf16.mxu1 %v2041_v11  ;;  %v273_v11 = vpop.permute.xlu1 %272 }
 0x71d   : > { %v278_v25 = vpop.permute.xlu1 %277 }
 0x720   : > { %1703 = vmatmul.mubr.msk.bf16.gmra.mrb[44].mxu1 %vm306_vm0, %v1795_v5 }
 0x7eb   : > { %v1534_v40 = vpop.f32.mrb[40].mxu1 }
 0x7ec   : > { %v1536_v9 = vpop.f32.mrb[41].mxu1  ;;  %v1535_v17 = vadd.f32 %v1534_v40, %v263_v7 }
 0x7ed   : > { %v1538_v19 = vpop.f32.mrb[42].mxu1  ;;  %v1537_v12 = vadd.f32 %v1536_v9, %v263_v7 }
 0x7ee   : > { %v1539_v14 = vadd.f32 %v1538_v19, %v268_v34  ;;  %v1540_v16 = vpop.f32.mrb[43].mxu1  ;;  %1553 = vst [vmem:[%s242_s28] sm:$0xff] %v1535_v17 }
 0x7ef   : > { %v1541_v20 = vadd.f32 %v1540_v16, %v268_v34  ;;  %1554 = vst [vmem:[%s242_s28 + $0x8] sm:$0xff] %v1537_v12 }
 0x7f0   : > { %1555 = vst [vmem:[%s242_s28 + $0x10] sm:$0xff] %v1539_v14 }
 0x7f1   : > { %1556 = vst [vmem:[%s242_s28 + $0x18] sm:$0xff] %v1541_v20 }
 0x7f3   : > { %v1544_v21 = vpop.f32.mrb[44].mxu1 }
 0x7f4   : > { %v1545_v23 = vadd.f32 %v1544_v21, %v273_v11  ;;  %v1546_v24 = vpop.f32.mrb[45].mxu1 }
 0x7f5   : > { %v1547_v13 = vadd.f32 %v1546_v24, %v273_v11  ;;  %v1548_v15 = vpop.f32.mrb[46].mxu1 }
 0x7f6   : > { %1557 = vst [vmem:[%s242_s28 + $0x20] sm:$0xff] %v1545_v23  ;;  %v1549_v27 = vadd.f32 %v1548_v15, %v278_v25  ;;  %v1550_v18 = vpop.f32.mrb[47].mxu1 }
 0x7f7   : > { %1558 = vst [vmem:[%s242_s28 + $0x28] sm:$0xff] %v1547_v13  ;;  %v1551_v22 = vadd.f32 %v1550_v18, %v278_v25 }
 0x7f8   : > { %1559 = vst [vmem:[%s242_s28 + $0x30] sm:$0xff] %v1549_v27 }
 0x7f9   : > { %1560 = vst [vmem:[%s242_s28 + $0x38] sm:$0xff] %v1551_v22 }
 0x7fa   : > { %1983 = shalt.err (!%p1980_p1)
}
 0x7fb   : > { %s1984_s11 = scalar_lea.hbm %s2421_s29, 1024  ;;  %s1988_s25 = scalar_lea.hbm %s2469_s5, 4096 }
 0x7fc   : > { %p1985_p3 = scmp.ne.s32.totalorder %s2421_s29, %s1984_s11  ;;  %p1989_p0 = scmp.lt.u32.totalorder %s2421_s29, %s2469_s5 }
 0x7fd   : > { %p1990_p2 = scmp.lt.u32.totalorder %s1988_s25, %s1984_s11  ;;  %p1992_p6 = scmp.lt.u32.totalorder %s1984_s11, %s2421_s29 }
 0x7fe   : > { %p1986_p4 = pnand %p1985_p3, %p2476_p10 }
 0x7ff   : > { %p1991_p7 = por %p1990_p2, %p1989_p0 }
 0x800   : > { %p1987_p5 = pneg %p1986_p4 }
 0x801   : > { %p1993_p11 = por %p1992_p6, %p1991_p7 }
 0x803   : > { %p1994_p12 = pnand %p1993_p11, %p1987_p5 }
 0x805   : > { %1997 = shalt.err (!%p1994_p12)
}
 0x806   : > { %s2043_s14 = smov 256   ;;  %s2044_s15 = smov 16  }
 0x807   : > { %1731 = dma.vmem_to_hbm [thread:$0]  (%p2476_p10), %s2416_s12, 1024, %s2421_s29, %s1562_s22, %s2043_s14, %s2043_s14, %s2044_s15  }
 0x808 PF: > { %p1742_p8 = scmp.ge.s32.totalorder %s2036_s21, 2  ;;  %s1590_s16 = sand.u32 1, %s2024_s18  }
 0x809   : > { %p2477_p9 = scmp.ne.s32.totalorder %s2474_s6, 0  ;;  %s1591_s8 = scalar_lea.sflag [#allocation4], %s1590_s16 }
 0x80b   : > { %p1738_p13 = pnand %p1742_p8, %p2477_p9 }
 0x80d   : > { %2019 = dma.done.wait (!%p1738_p13), %s1591_s8, 1024  }
 0x80e   : > { %2021 = vsyncadd (!%p1738_p13), %s1591_s8, 4294966272  ;;  %p18_p1 = scmp.ge.s32.totalorder %s2100_s24, 6   ;;  %s2478_s18 = smov %s2028_s19 }
 0x80f   : > { %s2479_s19 = smov %s2032_s20  ;;  %s2480_s20 = smov %s2112_s27 }
 0x810   : > { %s2481_s21 = smov %s2100_s24  ;;  %20 = sbr.rel (!%p18_p1) target bundleno = 5 (0x5), region = 88 }
 0x817   :  { %1596 = vsyncpa [#allocation3], 1 }
 0x818   :  { %1598 = vsyncpa [#allocation3 + $0x1], 1 }
 0x819   :  { %1599 = vsyncpa [#allocation4], 1 }
 0x81a   :  { %1601 = vsyncpa [#allocation4 + $0x1], 1 }

</bundles_post_ra>
